<compile_context>
chip_gen: v6e
topology: v6e:2x2x1
jax: 0.10.0
libtpu: 0.0.40
codegen_flags: <defaults>
</compile_context>

<pallas_src>
import functools

import jax
import jax.numpy as jnp
from jax.experimental import pallas as pl
from jax.experimental.pallas import tpu as pltpu


# ----------------------------------------------------------------------------
# Pallas GEMM kernel: o = act(a @ b + bias), batched on a leading parallel axis.
# ----------------------------------------------------------------------------
def _round_up(x, m):
    return (x + m - 1) // m * m


def _gemm_kernel(a_ref, b_ref, bias_ref, *o_refs, act, dual):
    """Blocks: a (1,tm,K) bf16, b (1,K,N) bf16, bias (1,1,N) f32.
    Single dot per tile (K is not tiled); f32 epilogue; store in out dtype."""
    r = jnp.dot(a_ref[0], b_ref[0], preferred_element_type=jnp.float32)
    r = r + bias_ref[0]                          # f32 epilogue
    if act == "leaky_relu":
        r = jnp.where(r > 0.0, r, 0.2 * r)
    elif act == "relu":
        r = jnp.maximum(r, 0.0)
    o_refs[0][0] = r.astype(o_refs[0].dtype)
    if dual:
        # sigmoid(x) == 0.5*(tanh(x/2)+1): single EUP op, exact, in [0,1].
        o_refs[1][0] = (0.5 * (jnp.tanh(0.5 * r) + 1.0)).astype(o_refs[1].dtype)


def gemm_bias_act(a, b, bias, *, act="none", dual=False, out_dtype=jnp.bfloat16):
    """a:(G,M,K)  b:(Gb,K,N) with Gb in {1,G}  bias:(Gb,N).
    Returns (G,M,N) in out_dtype, or (out, sigmoid(out)) when dual=True.
    bf16 MXU operands, f32 accumulation + epilogue."""
    G, M, K = a.shape
    Gb, Kb, N = b.shape
    assert Kb == K and Gb in (1, G) and bias.shape == (Gb, N)

    # M rounded to 16 (bf16 sublane packing).  Single M tile for the small
    # layers here; 512-row tiles for large M.  K and N are never padded.
    M_pad = _round_up(M, 16)
    if M_pad <= 1024:
        tm = M_pad
    else:
        tm = 512
        M_pad = _round_up(M_pad, tm)

    a_p = a.astype(jnp.bfloat16)                 # no-op when already bf16
    if M_pad != M:
        a_p = jnp.pad(a_p, ((0, 0), (0, M_pad - M), (0, 0)))
    b_p = b.astype(jnp.bfloat16)
    bias_p = bias.astype(jnp.float32).reshape(Gb, 1, N)

    grid = (G, M_pad // tm)
    shared = Gb != G
    b_idx = (lambda g, i: (0, 0, 0)) if shared else (lambda g, i: (g, 0, 0))

    out_shape = jax.ShapeDtypeStruct((G, M_pad, N), out_dtype)
    out_spec = pl.BlockSpec((1, tm, N), lambda g, i: (g, i, 0))
    if dual:
        out_shapes = (out_shape, jax.ShapeDtypeStruct((G, M_pad, N), out_dtype))
        out_specs = [out_spec, out_spec]
    else:
        out_shapes = out_shape
        out_specs = out_spec

    kern = functools.partial(_gemm_kernel, act=act, dual=dual)
    res = pl.pallas_call(
        kern,
        out_shape=out_shapes,
        grid_spec=pltpu.PrefetchScalarGridSpec(
            num_scalar_prefetch=0,
            grid=grid,
            in_specs=[
                pl.BlockSpec((1, tm, K), lambda g, i: (g, i, 0)),
                pl.BlockSpec((1, K, N), b_idx),      # full-extent, resident
                pl.BlockSpec((1, 1, N), b_idx),
            ],
            out_specs=out_specs,
        ),
        compiler_params=pltpu.CompilerParams(
            dimension_semantics=("parallel", "parallel")),
    )(a_p, b_p, bias_p)

    if dual:
        o, r = res
        return o[:, :M, :], r[:, :M, :]
    return res[:, :M, :]


# ----------------------------------------------------------------------------
# Convolution layers (NHWC; tiny layout glue in XLA, GEMM + epilogue in Pallas)
# ----------------------------------------------------------------------------
def conv4x4_s2_p1(x, w, b, act, out_dtype=jnp.bfloat16):
    """Conv2d(k=4, s=2, p=1) as pad + space-to-depth(2) + 2x2 valid conv.
    x:(N,H,W,Cin)  w:(Cout,Cin,4,4) torch layout  -> (N,H/2,W/2,Cout)."""
    n, h, wd, cin = x.shape
    cout = w.shape[0]
    ho, wo = h // 2, wd // 2
    xp = jnp.pad(x, ((0, 0), (1, 1), (1, 1), (0, 0)))
    hp, wp = h + 2, wd + 2
    xs = xp.reshape(n, hp // 2, 2, wp // 2, 2, cin)
    xs = xs.transpose(0, 1, 3, 2, 4, 5).reshape(n, hp // 2, wp // 2, 4 * cin)
    # 2x2 superpixel window: 4 unit-stride slices (no strided im2col).
    pats = jnp.stack([xs[:, dy:dy + ho, dx:dx + wo, :]
                      for dy in (0, 1) for dx in (0, 1)], axis=3)
    A = pats.reshape(n, ho * wo, 16 * cin)
    # weight rows ordered as (dy, dx, sy, sx, cin) to match the patch K layout
    wr = w.reshape(cout, cin, 2, 2, 2, 2)            # (co, ci, dy, sy, dx, sx)
    B = wr.transpose(2, 4, 3, 5, 1, 0).reshape(1, 16 * cin, cout)
    out = gemm_bias_act(A, B, b.reshape(1, cout), act=act, out_dtype=out_dtype)
    return out.reshape(n, ho, wo, cout)


def conv1x1(x, w, b, act="none", out_dtype=jnp.bfloat16):
    """Conv2d(k=1, s=1, p=0). x:(N,H,W,Cin)  w:(Cout,Cin,1,1)."""
    n, h, wd, cin = x.shape
    cout = w.shape[0]
    A = x.reshape(n, h * wd, cin)
    B = jnp.transpose(w.reshape(cout, cin), (1, 0)).reshape(1, cin, cout)
    out = gemm_bias_act(A, B, b.reshape(1, cout), act=act, out_dtype=out_dtype)
    return out.reshape(n, h, wd, cout)


def conv3x3_s1_p1_dual(x, w, b):
    """Conv2d(k=3, s=1, p=1) emitting (logits, sigmoid(logits)) in f32 from a
    single pallas_call (fused epilogue)."""
    n, h, wd, cin = x.shape
    cout = w.shape[0]
    xp = jnp.pad(x, ((0, 0), (1, 1), (1, 1), (0, 0)))
    pats = jnp.stack([xp[:, i:i + h, j:j + wd, :]
                      for i in range(3) for j in range(3)], axis=3)
    A = pats.reshape(n, h * wd, 9 * cin)
    B = jnp.transpose(w, (2, 3, 1, 0)).reshape(1, 9 * cin, cout)
    logits, rec = gemm_bias_act(A, B, b.reshape(1, cout), act="none",
                                dual=True, out_dtype=jnp.float32)
    return logits.reshape(n, h, wd, cout), rec.reshape(n, h, wd, cout)


def conv_transpose4x4_s2_p1(x, w, b, act="relu", out_dtype=jnp.bfloat16):
    """ConvTranspose2d(k=4, s=2, p=1) via sub-pixel phase decomposition:
    4 phase GEMMs batched on the parallel G axis (no zero-dilation).
    x:(N,H,W,Cin)  w:(Cin,Cout,4,4) torch layout  -> (N,2H,2W,Cout)."""
    n, h, wd, cin = x.shape
    cin2, cout, kh, kw = w.shape
    assert cin2 == cin and kh == 4 and kw == 4
    xp = jnp.pad(x, ((0, 0), (1, 1), (1, 1), (0, 0)))
    # shared 2x2-window stride-1 patches over the (H+1)x(W+1) grid
    P = jnp.stack([xp[:, ty:ty + h + 1, tx:tx + wd + 1, :]
                   for ty in (0, 1) for tx in (0, 1)], axis=3)  # (N,H+1,W+1,4,Cin)

    a_list, b_list = [], []
    for ry, rx in ((0, 0), (0, 1), (1, 0), (1, 1)):
        a_list.append(P[:, ry:ry + h, rx:rx + wd].reshape(n * h * wd, 4 * cin))
        # taps feeding output phase r: y[2q+0] = x[q-1]*w[3] + x[q]*w[1]
        #                              y[2q+1] = x[q]*w[2]   + x[q+1]*w[0]
        ky = (3, 1) if ry == 0 else (2, 0)
        kx = (3, 1) if rx == 0 else (2, 0)
        wsub = w[:, :, ky, :][:, :, :, kx]                      # (Cin,Cout,2,2)
        b_list.append(jnp.transpose(wsub, (2, 3, 0, 1)).reshape(4 * cin, cout))

    A = jnp.stack(a_list, axis=0)                               # (4, M, 4Cin)
    B = jnp.stack(b_list, axis=0)                               # (4, 4Cin, Cout)
    bias = jnp.broadcast_to(b, (4, cout))
    out = gemm_bias_act(A, B, bias, act=act, out_dtype=out_dtype)  # (4, M, Cout)
    # Phase interleave: one fused XLA reshape+transpose on a <=8 KB bf16 tensor.
    # TODO(synk): fold into the kernel (strided stores) at real resolutions.
    out = out.reshape(2, 2, n, h, wd, cout)
    out = out.transpose(2, 3, 0, 4, 1, 5).reshape(n, 2 * h, 2 * wd, cout)
    return out


# ----------------------------------------------------------------------------
# AnoVAEGAN model (encoder -> (mu, logvar), decoder(z) -> logits)
# ----------------------------------------------------------------------------
def init_params(key, in_channels, n_layers, ndf, zdim):
    params = {"enc": [], "dec": []}

    def _wb(k, shape, bias_dim):
        kw_, kb_ = jax.random.split(k)
        w = 0.05 * jax.random.normal(kw_, shape, dtype=jnp.float32)
        b = 0.01 * jax.random.normal(kb_, (bias_dim,), dtype=jnp.float32)
        return w, b

    keys = jax.random.split(key, 2 * n_layers + 3)
    ki = 0

    # encoder: n_layers stride-2 4x4 convs, LeakyReLU(0.2)
    enc_channels = [in_channels] + [ndf * (2 ** i) for i in range(n_layers)]
    for i in range(n_layers):
        shape = (enc_channels[i + 1], enc_channels[i], 4, 4)
        params["enc"].append(_wb(keys[ki], shape, shape[0])); ki += 1
    # latent heads: 1x1 convs
    params["mu_head"] = _wb(keys[ki], (zdim, enc_channels[-1], 1, 1), zdim); ki += 1
    params["logvar_head"] = _wb(keys[ki], (zdim, enc_channels[-1], 1, 1), zdim); ki += 1

    # decoder: n_layers stride-2 4x4 transposed convs (ReLU), then 3x3 conv head
    dec_out = [ndf * (2 ** i) for i in reversed(range(n_layers))]
    dec_in = [zdim] + dec_out[:-1]
    for i in range(n_layers):
        shape = (dec_in[i], dec_out[i], 4, 4)     # ConvTranspose layout (Cin,Cout,K,K)
        params["dec"].append(_wb(keys[ki], shape, dec_out[i])); ki += 1
    params["final"] = _wb(keys[ki], (in_channels, dec_out[-1], 3, 3), in_channels)
    return params


def encoder_forward(params, x):
    h = x.astype(jnp.bfloat16)                    # one cast at the boundary
    for (w, b) in params["enc"]:
        h = conv4x4_s2_p1(h, w, b, act="leaky_relu", out_dtype=jnp.bfloat16)
    # Fused mu/logvar 1x1 heads: one GEMM with Cout = 2*zdim, f32 outputs.
    wm, bm = params["mu_head"]
    wl, bl = params["logvar_head"]
    w_cat = jnp.concatenate([wm, wl], axis=0)
    b_cat = jnp.concatenate([bm, bl], axis=0)
    heads = conv1x1(h, w_cat, b_cat, act="none", out_dtype=jnp.float32)
    zdim = wm.shape[0]
    return heads[..., :zdim], heads[..., zdim:]


def decoder_forward(params, z):
    h = z.astype(jnp.bfloat16)
    for (w, b) in params["dec"]:
        h = conv_transpose4x4_s2_p1(h, w, b, act="relu", out_dtype=jnp.bfloat16)
    wf, bf = params["final"]
    # logits + sigmoid(logits) emitted by the same pallas_call (fused epilogue).
    return conv3x3_s1_p1_dual(h, wf, bf)


def anovaegan_forward(params, x_nchw, training=False, eps_key=None):
    x = jnp.transpose(x_nchw, (0, 2, 3, 1))       # NCHW -> NHWC, once
    mu, logvar = encoder_forward(params, x)
    if training:
        std = jnp.exp(0.5 * logvar)
        eps = jax.random.normal(eps_key, std.shape, dtype=std.dtype)
        z = mu + std * eps
    else:
        z = mu
    logits, rec = decoder_forward(params, z)
    to_nchw = lambda t: jnp.transpose(t, (0, 3, 1, 2))
    return {"mu": to_nchw(mu), "logvar": to_nchw(logvar),
            "logits": to_nchw(logits), "rec": to_nchw(rec)}


# ----------------------------------------------------------------------------
if __name__ == "__main__":
    # small shapes consistent with the module: NCHW = (2, 4, 16, 16)
    IN_CHANNELS, N_LAYERS, NDF, ZDIM = 4, 2, 8, 16
    key = jax.random.PRNGKey(0)
    k_params, k_x = jax.random.split(key)

    params = init_params(k_params, IN_CHANNELS, N_LAYERS, NDF, ZDIM)
    x = jax.random.normal(k_x, (2, IN_CHANNELS, 16, 16), dtype=jnp.float32)

    out = jax.jit(lambda p, xx: anovaegan_forward(p, xx, training=False))(params, x)
    out = jax.block_until_ready(out)

    # sanity checks on shapes / values
    assert out["mu"].shape == (2, ZDIM, 4, 4)
    assert out["logvar"].shape == (2, ZDIM, 4, 4)
    assert out["logits"].shape == x.shape
    assert out["rec"].shape == x.shape
    assert bool(jnp.all(jnp.isfinite(out["logits"])))
    assert bool(jnp.all((out["rec"] >= 0.0) & (out["rec"] <= 1.0)))

    print("KERNEL_OK")
</pallas_src>

<mosaic_0001>
module attributes {stable_mosaic.version = 11 : i64} {
  func.func @_gemm_kernel(%arg0: i32, %arg1: i32, %arg2: memref<1x64x64xbf16, #tpu.memory_space<vmem>>, %arg3: memref<1x64x8xbf16, #tpu.memory_space<vmem>>, %arg4: memref<1x1x8xf32, #tpu.memory_space<vmem>>, %arg5: memref<1x64x8xbf16, #tpu.memory_space<vmem>>) attributes {dimension_semantics = [#tpu.dimension_semantics<parallel>, #tpu.dimension_semantics<parallel>], iteration_bounds = array<i64: 2, 1>, scalar_prefetch = 0 : i64, scratch_operands = 0 : i64, tpu.core_type = #tpu.core_type<tc>, window_params = [{transform_indices = @transform_0, window_bounds = array<i64: 1, 64, 64>}, {pipeline_mode = #tpu.pipeline_mode<synchronous>, transform_indices = @transform_1, window_bounds = array<i64: 1, 64, 8>}, {pipeline_mode = #tpu.pipeline_mode<synchronous>, transform_indices = @transform_2, window_bounds = array<i64: 1, 1, 8>}, {transform_indices = @transform_3, window_bounds = array<i64: 1, 64, 8>}]} {
    %c0 = arith.constant 0 : index
    %c0_0 = arith.constant 0 : index
    %c0_1 = arith.constant 0 : index
    %0 = vector.load %arg2[%c0, %c0_0, %c0_1] : memref<1x64x64xbf16, #tpu.memory_space<vmem>>, vector<1x64x64xbf16>
    %1 = vector.shape_cast %0 : vector<1x64x64xbf16> to vector<64x64xbf16>
    %c0_2 = arith.constant 0 : index
    %c0_3 = arith.constant 0 : index
    %c0_4 = arith.constant 0 : index
    %2 = vector.load %arg3[%c0_2, %c0_3, %c0_4] : memref<1x64x8xbf16, #tpu.memory_space<vmem>>, vector<1x64x8xbf16>
    %3 = vector.shape_cast %2 : vector<1x64x8xbf16> to vector<64x8xbf16>
    %cst = arith.constant dense<0.000000e+00> : vector<64x8xf32>
    %4 = tpu.matmul %1, %3, %cst {dimension_numbers = #tpu.dot_dimension_numbers<[1], [0], [0], [1], [0, 0, 1, 1], [], []>} : vector<64x64xbf16>, vector<64x8xbf16>, vector<64x8xf32> -> vector<64x8xf32>
    %c0_5 = arith.constant 0 : index
    %c0_6 = arith.constant 0 : index
    %c0_7 = arith.constant 0 : index
    %5 = vector.load %arg4[%c0_5, %c0_6, %c0_7] : memref<1x1x8xf32, #tpu.memory_space<vmem>>, vector<1x1x8xf32>
    %6 = vector.shape_cast %5 : vector<1x1x8xf32> to vector<1x8xf32>
    %7 = vector.broadcast %6 : vector<1x8xf32> to vector<64x8xf32>
    %8 = arith.addf %4, %7 : vector<64x8xf32>
    %cst_8 = arith.constant 0.000000e+00 : f32
    %9 = vector.broadcast %cst_8 : f32 to vector<64x8xf32>
    %10 = arith.cmpf ogt, %8, %9 : vector<64x8xf32>
    %cst_9 = arith.constant 2.000000e-01 : f32
    %11 = vector.broadcast %cst_9 : f32 to vector<64x8xf32>
    %12 = arith.mulf %11, %8 : vector<64x8xf32>
    %13 = arith.select %10, %8, %12 : vector<64x8xi1>, vector<64x8xf32>
    %14 = arith.truncf %13 : vector<64x8xf32> to vector<64x8xbf16>
    %c0_10 = arith.constant 0 : index
    %c0_11 = arith.constant 0 : index
    %c0_12 = arith.constant 0 : index
    %15 = vector.load %arg5[%c0_10, %c0_11, %c0_12] : memref<1x64x8xbf16, #tpu.memory_space<vmem>>, vector<1x64x8xbf16>
    %16 = vector.shape_cast %15 : vector<1x64x8xbf16> to vector<64x8xbf16>
    %17 = vector.shape_cast %14 : vector<64x8xbf16> to vector<1x64x8xbf16>
    tpu.vector_store %arg5[%c0_10, %c0_11, %c0_12], %17 {strides = array<i32>} : memref<1x64x8xbf16, #tpu.memory_space<vmem>>, vector<1x64x8xbf16>,
    return
  }
  func.func @transform_0(%arg0: i32, %arg1: i32) -> (i32, i32, i32) {
    %c0_i32 = arith.constant 0 : i32
    %c0_i32_0 = arith.constant 0 : i32
    return %arg0, %arg1, %c0_i32 : i32, i32, i32
  }
  func.func @transform_1(%arg0: i32, %arg1: i32) -> (i32, i32, i32) {
    %c0_i32 = arith.constant 0 : i32
    %c0_i32_0 = arith.constant 0 : i32
    %c0_i32_1 = arith.constant 0 : i32
    %c0_i32_2 = arith.constant 0 : i32
    return %c0_i32, %c0_i32_0, %c0_i32_1 : i32, i32, i32
  }
  func.func @transform_2(%arg0: i32, %arg1: i32) -> (i32, i32, i32) {
    %c0_i32 = arith.constant 0 : i32
    %c0_i32_0 = arith.constant 0 : i32
    %c0_i32_1 = arith.constant 0 : i32
    %c0_i32_2 = arith.constant 0 : i32
    return %c0_i32, %c0_i32_0, %c0_i32_1 : i32, i32, i32
  }
  func.func @transform_3(%arg0: i32, %arg1: i32) -> (i32, i32, i32) {
    %c0_i32 = arith.constant 0 : i32
    %c0_i32_0 = arith.constant 0 : i32
    return %arg0, %arg1, %c0_i32 : i32, i32, i32
  }
}

module attributes {stable_mosaic.version = 11 : i64} {
  func.func @_gemm_kernel(%arg0: i32, %arg1: i32, %arg2: memref<1x16x128xbf16, #tpu.memory_space<vmem>>, %arg3: memref<1x128x16xbf16, #tpu.memory_space<vmem>>, %arg4: memref<1x1x16xf32, #tpu.memory_space<vmem>>, %arg5: memref<1x16x16xbf16, #tpu.memory_space<vmem>>) attributes {dimension_semantics = [#tpu.dimension_semantics<parallel>, #tpu.dimension_semantics<parallel>], iteration_bounds = array<i64: 2, 1>, scalar_prefetch = 0 : i64, scratch_operands = 0 : i64, tpu.core_type = #tpu.core_type<tc>, window_params = [{transform_indices = @transform_0, window_bounds = array<i64: 1, 16, 128>}, {pipeline_mode = #tpu.pipeline_mode<synchronous>, transform_indices = @transform_1, window_bounds = array<i64: 1, 128, 16>}, {pipeline_mode = #tpu.pipeline_mode<synchronous>, transform_indices = @transform_2, window_bounds = array<i64: 1, 1, 16>}, {transform_indices = @transform_3, window_bounds = array<i64: 1, 16, 16>}]} {
    %c0 = arith.constant 0 : index
    %c0_0 = arith.constant 0 : index
    %c0_1 = arith.constant 0 : index
    %0 = vector.load %arg2[%c0, %c0_0, %c0_1] : memref<1x16x128xbf16, #tpu.memory_space<vmem>>, vector<1x16x128xbf16>
    %1 = vector.shape_cast %0 : vector<1x16x128xbf16> to vector<16x128xbf16>
    %c0_2 = arith.constant 0 : index
    %c0_3 = arith.constant 0 : index
    %c0_4 = arith.constant 0 : index
    %2 = vector.load %arg3[%c0_2, %c0_3, %c0_4] : memref<1x128x16xbf16, #tpu.memory_space<vmem>>, vector<1x128x16xbf16>
    %3 = vector.shape_cast %2 : vector<1x128x16xbf16> to vector<128x16xbf16>
    %cst = arith.constant dense<0.000000e+00> : vector<16x16xf32>
    %4 = tpu.matmul %1, %3, %cst {dimension_numbers = #tpu.dot_dimension_numbers<[1], [0], [0], [1], [0, 0, 1, 1], [], []>} : vector<16x128xbf16>, vector<128x16xbf16>, vector<16x16xf32> -> vector<16x16xf32>
    %c0_5 = arith.constant 0 : index
    %c0_6 = arith.constant 0 : index
    %c0_7 = arith.constant 0 : index
    %5 = vector.load %arg4[%c0_5, %c0_6, %c0_7] : memref<1x1x16xf32, #tpu.memory_space<vmem>>, vector<1x1x16xf32>
    %6 = vector.shape_cast %5 : vector<1x1x16xf32> to vector<1x16xf32>
    %7 = vector.broadcast %6 : vector<1x16xf32> to vector<16x16xf32>
    %8 = arith.addf %4, %7 : vector<16x16xf32>
    %cst_8 = arith.constant 0.000000e+00 : f32
    %9 = vector.broadcast %cst_8 : f32 to vector<16x16xf32>
    %10 = arith.cmpf ogt, %8, %9 : vector<16x16xf32>
    %cst_9 = arith.constant 2.000000e-01 : f32
    %11 = vector.broadcast %cst_9 : f32 to vector<16x16xf32>
    %12 = arith.mulf %11, %8 : vector<16x16xf32>
    %13 = arith.select %10, %8, %12 : vector<16x16xi1>, vector<16x16xf32>
    %14 = arith.truncf %13 : vector<16x16xf32> to vector<16x16xbf16>
    %c0_10 = arith.constant 0 : index
    %c0_11 = arith.constant 0 : index
    %c0_12 = arith.constant 0 : index
    %15 = vector.load %arg5[%c0_10, %c0_11, %c0_12] : memref<1x16x16xbf16, #tpu.memory_space<vmem>>, vector<1x16x16xbf16>
    %16 = vector.shape_cast %15 : vector<1x16x16xbf16> to vector<16x16xbf16>
    %17 = vector.shape_cast %14 : vector<16x16xbf16> to vector<1x16x16xbf16>
    tpu.vector_store %arg5[%c0_10, %c0_11, %c0_12], %17 {strides = array<i32>} : memref<1x16x16xbf16, #tpu.memory_space<vmem>>, vector<1x16x16xbf16>,
    return
  }
  func.func @transform_0(%arg0: i32, %arg1: i32) -> (i32, i32, i32) {
    %c0_i32 = arith.constant 0 : i32
    %c0_i32_0 = arith.constant 0 : i32
    return %arg0, %arg1, %c0_i32 : i32, i32, i32
  }
  func.func @transform_1(%arg0: i32, %arg1: i32) -> (i32, i32, i32) {
    %c0_i32 = arith.constant 0 : i32
    %c0_i32_0 = arith.constant 0 : i32
    %c0_i32_1 = arith.constant 0 : i32
    %c0_i32_2 = arith.constant 0 : i32
    return %c0_i32, %c0_i32_0, %c0_i32_1 : i32, i32, i32
  }
  func.func @transform_2(%arg0: i32, %arg1: i32) -> (i32, i32, i32) {
    %c0_i32 = arith.constant 0 : i32
    %c0_i32_0 = arith.constant 0 : i32
    %c0_i32_1 = arith.constant 0 : i32
    %c0_i32_2 = arith.constant 0 : i32
    return %c0_i32, %c0_i32_0, %c0_i32_1 : i32, i32, i32
  }
  func.func @transform_3(%arg0: i32, %arg1: i32) -> (i32, i32, i32) {
    %c0_i32 = arith.constant 0 : i32
    %c0_i32_0 = arith.constant 0 : i32
    return %arg0, %arg1, %c0_i32 : i32, i32, i32
  }
}

module attributes {stable_mosaic.version = 11 : i64} {
  func.func @_gemm_kernel(%arg0: i32, %arg1: i32, %arg2: memref<1x16x16xbf16, #tpu.memory_space<vmem>>, %arg3: memref<1x16x32xbf16, #tpu.memory_space<vmem>>, %arg4: memref<1x1x32xf32, #tpu.memory_space<vmem>>, %arg5: memref<1x16x32xf32, #tpu.memory_space<vmem>>) attributes {dimension_semantics = [#tpu.dimension_semantics<parallel>, #tpu.dimension_semantics<parallel>], iteration_bounds = array<i64: 2, 1>, scalar_prefetch = 0 : i64, scratch_operands = 0 : i64, tpu.core_type = #tpu.core_type<tc>, window_params = [{transform_indices = @transform_0, window_bounds = array<i64: 1, 16, 16>}, {pipeline_mode = #tpu.pipeline_mode<synchronous>, transform_indices = @transform_1, window_bounds = array<i64: 1, 16, 32>}, {pipeline_mode = #tpu.pipeline_mode<synchronous>, transform_indices = @transform_2, window_bounds = array<i64: 1, 1, 32>}, {transform_indices = @transform_3, window_bounds = array<i64: 1, 16, 32>}]} {
    %c0 = arith.constant 0 : index
    %c0_0 = arith.constant 0 : index
    %c0_1 = arith.constant 0 : index
    %0 = vector.load %arg2[%c0, %c0_0, %c0_1] : memref<1x16x16xbf16, #tpu.memory_space<vmem>>, vector<1x16x16xbf16>
    %1 = vector.shape_cast %0 : vector<1x16x16xbf16> to vector<16x16xbf16>
    %c0_2 = arith.constant 0 : index
    %c0_3 = arith.constant 0 : index
    %c0_4 = arith.constant 0 : index
    %2 = vector.load %arg3[%c0_2, %c0_3, %c0_4] : memref<1x16x32xbf16, #tpu.memory_space<vmem>>, vector<1x16x32xbf16>
    %3 = vector.shape_cast %2 : vector<1x16x32xbf16> to vector<16x32xbf16>
    %cst = arith.constant dense<0.000000e+00> : vector<16x32xf32>
    %4 = tpu.matmul %1, %3, %cst {dimension_numbers = #tpu.dot_dimension_numbers<[1], [0], [0], [1], [0, 0, 1, 1], [], []>} : vector<16x16xbf16>, vector<16x32xbf16>, vector<16x32xf32> -> vector<16x32xf32>
    %c0_5 = arith.constant 0 : index
    %c0_6 = arith.constant 0 : index
    %c0_7 = arith.constant 0 : index
    %5 = vector.load %arg4[%c0_5, %c0_6, %c0_7] : memref<1x1x32xf32, #tpu.memory_space<vmem>>, vector<1x1x32xf32>
    %6 = vector.shape_cast %5 : vector<1x1x32xf32> to vector<1x32xf32>
    %7 = vector.broadcast %6 : vector<1x32xf32> to vector<16x32xf32>
    %8 = arith.addf %4, %7 : vector<16x32xf32>
    %c0_8 = arith.constant 0 : index
    %c0_9 = arith.constant 0 : index
    %c0_10 = arith.constant 0 : index
    %9 = vector.load %arg5[%c0_8, %c0_9, %c0_10] : memref<1x16x32xf32, #tpu.memory_space<vmem>>, vector<1x16x32xf32>
    %10 = vector.shape_cast %9 : vector<1x16x32xf32> to vector<16x32xf32>
    %11 = vector.shape_cast %8 : vector<16x32xf32> to vector<1x16x32xf32>
    tpu.vector_store %arg5[%c0_8, %c0_9, %c0_10], %11 {strides = array<i32>} : memref<1x16x32xf32, #tpu.memory_space<vmem>>, vector<1x16x32xf32>,
    return
  }
  func.func @transform_0(%arg0: i32, %arg1: i32) -> (i32, i32, i32) {
    %c0_i32 = arith.constant 0 : i32
    %c0_i32_0 = arith.constant 0 : i32
    return %arg0, %arg1, %c0_i32 : i32, i32, i32
  }
  func.func @transform_1(%arg0: i32, %arg1: i32) -> (i32, i32, i32) {
    %c0_i32 = arith.constant 0 : i32
    %c0_i32_0 = arith.constant 0 : i32
    %c0_i32_1 = arith.constant 0 : i32
    %c0_i32_2 = arith.constant 0 : i32
    return %c0_i32, %c0_i32_0, %c0_i32_1 : i32, i32, i32
  }
  func.func @transform_2(%arg0: i32, %arg1: i32) -> (i32, i32, i32) {
    %c0_i32 = arith.constant 0 : i32
    %c0_i32_0 = arith.constant 0 : i32
    %c0_i32_1 = arith.constant 0 : i32
    %c0_i32_2 = arith.constant 0 : i32
    return %c0_i32, %c0_i32_0, %c0_i32_1 : i32, i32, i32
  }
  func.func @transform_3(%arg0: i32, %arg1: i32) -> (i32, i32, i32) {
    %c0_i32 = arith.constant 0 : i32
    %c0_i32_0 = arith.constant 0 : i32
    return %arg0, %arg1, %c0_i32 : i32, i32, i32
  }
}

module attributes {stable_mosaic.version = 11 : i64} {
  func.func @_gemm_kernel(%arg0: i32, %arg1: i32, %arg2: memref<1x32x64xbf16, #tpu.memory_space<vmem>>, %arg3: memref<1x64x16xbf16, #tpu.memory_space<vmem>>, %arg4: memref<1x1x16xf32, #tpu.memory_space<vmem>>, %arg5: memref<1x32x16xbf16, #tpu.memory_space<vmem>>) attributes {dimension_semantics = [#tpu.dimension_semantics<parallel>, #tpu.dimension_semantics<parallel>], iteration_bounds = array<i64: 4, 1>, scalar_prefetch = 0 : i64, scratch_operands = 0 : i64, tpu.core_type = #tpu.core_type<tc>, window_params = [{transform_indices = @transform_0, window_bounds = array<i64: 1, 32, 64>}, {transform_indices = @transform_1, window_bounds = array<i64: 1, 64, 16>}, {transform_indices = @transform_2, window_bounds = array<i64: 1, 1, 16>}, {transform_indices = @transform_3, window_bounds = array<i64: 1, 32, 16>}]} {
    %c0 = arith.constant 0 : index
    %c0_0 = arith.constant 0 : index
    %c0_1 = arith.constant 0 : index
    %0 = vector.load %arg2[%c0, %c0_0, %c0_1] : memref<1x32x64xbf16, #tpu.memory_space<vmem>>, vector<1x32x64xbf16>
    %1 = vector.shape_cast %0 : vector<1x32x64xbf16> to vector<32x64xbf16>
    %c0_2 = arith.constant 0 : index
    %c0_3 = arith.constant 0 : index
    %c0_4 = arith.constant 0 : index
    %2 = vector.load %arg3[%c0_2, %c0_3, %c0_4] : memref<1x64x16xbf16, #tpu.memory_space<vmem>>, vector<1x64x16xbf16>
    %3 = vector.shape_cast %2 : vector<1x64x16xbf16> to vector<64x16xbf16>
    %cst = arith.constant dense<0.000000e+00> : vector<32x16xf32>
    %4 = tpu.matmul %1, %3, %cst {dimension_numbers = #tpu.dot_dimension_numbers<[1], [0], [0], [1], [0, 0, 1, 1], [], []>} : vector<32x64xbf16>, vector<64x16xbf16>, vector<32x16xf32> -> vector<32x16xf32>
    %c0_5 = arith.constant 0 : index
    %c0_6 = arith.constant 0 : index
    %c0_7 = arith.constant 0 : index
    %5 = vector.load %arg4[%c0_5, %c0_6, %c0_7] : memref<1x1x16xf32, #tpu.memory_space<vmem>>, vector<1x1x16xf32>
    %6 = vector.shape_cast %5 : vector<1x1x16xf32> to vector<1x16xf32>
    %7 = vector.broadcast %6 : vector<1x16xf32> to vector<32x16xf32>
    %8 = arith.addf %4, %7 : vector<32x16xf32>
    %cst_8 = arith.constant 0.000000e+00 : f32
    %9 = vector.broadcast %cst_8 : f32 to vector<32x16xf32>
    %10 = arith.maximumf %8, %9 : vector<32x16xf32>
    %11 = arith.truncf %10 : vector<32x16xf32> to vector<32x16xbf16>
    %c0_9 = arith.constant 0 : index
    %c0_10 = arith.constant 0 : index
    %c0_11 = arith.constant 0 : index
    %12 = vector.load %arg5[%c0_9, %c0_10, %c0_11] : memref<1x32x16xbf16, #tpu.memory_space<vmem>>, vector<1x32x16xbf16>
    %13 = vector.shape_cast %12 : vector<1x32x16xbf16> to vector<32x16xbf16>
    %14 = vector.shape_cast %11 : vector<32x16xbf16> to vector<1x32x16xbf16>
    tpu.vector_store %arg5[%c0_9, %c0_10, %c0_11], %14 {strides = array<i32>} : memref<1x32x16xbf16, #tpu.memory_space<vmem>>, vector<1x32x16xbf16>,
    return
  }
  func.func @transform_0(%arg0: i32, %arg1: i32) -> (i32, i32, i32) {
    %c0_i32 = arith.constant 0 : i32
    %c0_i32_0 = arith.constant 0 : i32
    return %arg0, %arg1, %c0_i32 : i32, i32, i32
  }
  func.func @transform_1(%arg0: i32, %arg1: i32) -> (i32, i32, i32) {
    %c0_i32 = arith.constant 0 : i32
    %c0_i32_0 = arith.constant 0 : i32
    %c0_i32_1 = arith.constant 0 : i32
    return %arg0, %c0_i32, %c0_i32_0 : i32, i32, i32
  }
  func.func @transform_2(%arg0: i32, %arg1: i32) -> (i32, i32, i32) {
    %c0_i32 = arith.constant 0 : i32
    %c0_i32_0 = arith.constant 0 : i32
    %c0_i32_1 = arith.constant 0 : i32
    return %arg0, %c0_i32, %c0_i32_0 : i32, i32, i32
  }
  func.func @transform_3(%arg0: i32, %arg1: i32) -> (i32, i32, i32) {
    %c0_i32 = arith.constant 0 : i32
    %c0_i32_0 = arith.constant 0 : i32
    return %arg0, %arg1, %c0_i32 : i32, i32, i32
  }
}

module attributes {stable_mosaic.version = 11 : i64} {
  func.func @_gemm_kernel(%arg0: i32, %arg1: i32, %arg2: memref<1x128x64xbf16, #tpu.memory_space<vmem>>, %arg3: memref<1x64x8xbf16, #tpu.memory_space<vmem>>, %arg4: memref<1x1x8xf32, #tpu.memory_space<vmem>>, %arg5: memref<1x128x8xbf16, #tpu.memory_space<vmem>>) attributes {dimension_semantics = [#tpu.dimension_semantics<parallel>, #tpu.dimension_semantics<parallel>], iteration_bounds = array<i64: 4, 1>, scalar_prefetch = 0 : i64, scratch_operands = 0 : i64, tpu.core_type = #tpu.core_type<tc>, window_params = [{transform_indices = @transform_0, window_bounds = array<i64: 1, 128, 64>}, {transform_indices = @transform_1, window_bounds = array<i64: 1, 64, 8>}, {transform_indices = @transform_2, window_bounds = array<i64: 1, 1, 8>}, {transform_indices = @transform_3, window_bounds = array<i64: 1, 128, 8>}]} {
    %c0 = arith.constant 0 : index
    %c0_0 = arith.constant 0 : index
    %c0_1 = arith.constant 0 : index
    %0 = vector.load %arg2[%c0, %c0_0, %c0_1] : memref<1x128x64xbf16, #tpu.memory_space<vmem>>, vector<1x128x64xbf16>
    %1 = vector.shape_cast %0 : vector<1x128x64xbf16> to vector<128x64xbf16>
    %c0_2 = arith.constant 0 : index
    %c0_3 = arith.constant 0 : index
    %c0_4 = arith.constant 0 : index
    %2 = vector.load %arg3[%c0_2, %c0_3, %c0_4] : memref<1x64x8xbf16, #tpu.memory_space<vmem>>, vector<1x64x8xbf16>
    %3 = vector.shape_cast %2 : vector<1x64x8xbf16> to vector<64x8xbf16>
    %cst = arith.constant dense<0.000000e+00> : vector<128x8xf32>
    %4 = tpu.matmul %1, %3, %cst {dimension_numbers = #tpu.dot_dimension_numbers<[1], [0], [0], [1], [0, 0, 1, 1], [], []>} : vector<128x64xbf16>, vector<64x8xbf16>, vector<128x8xf32> -> vector<128x8xf32>
    %c0_5 = arith.constant 0 : index
    %c0_6 = arith.constant 0 : index
    %c0_7 = arith.constant 0 : index
    %5 = vector.load %arg4[%c0_5, %c0_6, %c0_7] : memref<1x1x8xf32, #tpu.memory_space<vmem>>, vector<1x1x8xf32>
    %6 = vector.shape_cast %5 : vector<1x1x8xf32> to vector<1x8xf32>
    %7 = vector.broadcast %6 : vector<1x8xf32> to vector<128x8xf32>
    %8 = arith.addf %4, %7 : vector<128x8xf32>
    %cst_8 = arith.constant 0.000000e+00 : f32
    %9 = vector.broadcast %cst_8 : f32 to vector<128x8xf32>
    %10 = arith.maximumf %8, %9 : vector<128x8xf32>
    %11 = arith.truncf %10 : vector<128x8xf32> to vector<128x8xbf16>
    %c0_9 = arith.constant 0 : index
    %c0_10 = arith.constant 0 : index
    %c0_11 = arith.constant 0 : index
    %12 = vector.load %arg5[%c0_9, %c0_10, %c0_11] : memref<1x128x8xbf16, #tpu.memory_space<vmem>>, vector<1x128x8xbf16>
    %13 = vector.shape_cast %12 : vector<1x128x8xbf16> to vector<128x8xbf16>
    %14 = vector.shape_cast %11 : vector<128x8xbf16> to vector<1x128x8xbf16>
    tpu.vector_store %arg5[%c0_9, %c0_10, %c0_11], %14 {strides = array<i32>} : memref<1x128x8xbf16, #tpu.memory_space<vmem>>, vector<1x128x8xbf16>,
    return
  }
  func.func @transform_0(%arg0: i32, %arg1: i32) -> (i32, i32, i32) {
    %c0_i32 = arith.constant 0 : i32
    %c0_i32_0 = arith.constant 0 : i32
    return %arg0, %arg1, %c0_i32 : i32, i32, i32
  }
  func.func @transform_1(%arg0: i32, %arg1: i32) -> (i32, i32, i32) {
    %c0_i32 = arith.constant 0 : i32
    %c0_i32_0 = arith.constant 0 : i32
    %c0_i32_1 = arith.constant 0 : i32
    return %arg0, %c0_i32, %c0_i32_0 : i32, i32, i32
  }
  func.func @transform_2(%arg0: i32, %arg1: i32) -> (i32, i32, i32) {
    %c0_i32 = arith.constant 0 : i32
    %c0_i32_0 = arith.constant 0 : i32
    %c0_i32_1 = arith.constant 0 : i32
    return %arg0, %c0_i32, %c0_i32_0 : i32, i32, i32
  }
  func.func @transform_3(%arg0: i32, %arg1: i32) -> (i32, i32, i32) {
    %c0_i32 = arith.constant 0 : i32
    %c0_i32_0 = arith.constant 0 : i32
    return %arg0, %arg1, %c0_i32 : i32, i32, i32
  }
}

module attributes {stable_mosaic.version = 11 : i64} {
  func.func @_gemm_kernel(%arg0: i32, %arg1: i32, %arg2: memref<1x256x72xbf16, #tpu.memory_space<vmem>>, %arg3: memref<1x72x4xbf16, #tpu.memory_space<vmem>>, %arg4: memref<1x1x4xf32, #tpu.memory_space<vmem>>, %arg5: memref<1x256x4xf32, #tpu.memory_space<vmem>>, %arg6: memref<1x256x4xf32, #tpu.memory_space<vmem>>) attributes {dimension_semantics = [#tpu.dimension_semantics<parallel>, #tpu.dimension_semantics<parallel>], iteration_bounds = array<i64: 2, 1>, scalar_prefetch = 0 : i64, scratch_operands = 0 : i64, tpu.core_type = #tpu.core_type<tc>, window_params = [{transform_indices = @transform_0, window_bounds = array<i64: 1, 256, 72>}, {pipeline_mode = #tpu.pipeline_mode<synchronous>, transform_indices = @transform_1, window_bounds = array<i64: 1, 72, 4>}, {pipeline_mode = #tpu.pipeline_mode<synchronous>, transform_indices = @transform_2, window_bounds = array<i64: 1, 1, 4>}, {transform_indices = @transform_3, window_bounds = array<i64: 1, 256, 4>}, {transform_indices = @transform_4, window_bounds = array<i64: 1, 256, 4>}]} {
    %c0 = arith.constant 0 : index
    %c0_0 = arith.constant 0 : index
    %c0_1 = arith.constant 0 : index
    %0 = vector.load %arg2[%c0, %c0_0, %c0_1] : memref<1x256x72xbf16, #tpu.memory_space<vmem>>, vector<1x256x72xbf16>
    %1 = vector.shape_cast %0 : vector<1x256x72xbf16> to vector<256x72xbf16>
    %c0_2 = arith.constant 0 : index
    %c0_3 = arith.constant 0 : index
    %c0_4 = arith.constant 0 : index
    %2 = vector.load %arg3[%c0_2, %c0_3, %c0_4] : memref<1x72x4xbf16, #tpu.memory_space<vmem>>, vector<1x72x4xbf16>
    %3 = vector.shape_cast %2 : vector<1x72x4xbf16> to vector<72x4xbf16>
    %cst = arith.constant dense<0.000000e+00> : vector<256x4xf32>
    %4 = tpu.matmul %1, %3, %cst {dimension_numbers = #tpu.dot_dimension_numbers<[1], [0], [0], [1], [0, 0, 1, 1], [], []>} : vector<256x72xbf16>, vector<72x4xbf16>, vector<256x4xf32> -> vector<256x4xf32>
    %c0_5 = arith.constant 0 : index
    %c0_6 = arith.constant 0 : index
    %c0_7 = arith.constant 0 : index
    %5 = vector.load %arg4[%c0_5, %c0_6, %c0_7] : memref<1x1x4xf32, #tpu.memory_space<vmem>>, vector<1x1x4xf32>
    %6 = vector.shape_cast %5 : vector<1x1x4xf32> to vector<1x4xf32>
    %7 = vector.broadcast %6 : vector<1x4xf32> to vector<256x4xf32>
    %8 = arith.addf %4, %7 : vector<256x4xf32>
    %c0_8 = arith.constant 0 : index
    %c0_9 = arith.constant 0 : index
    %c0_10 = arith.constant 0 : index
    %9 = vector.load %arg5[%c0_8, %c0_9, %c0_10] : memref<1x256x4xf32, #tpu.memory_space<vmem>>, vector<1x256x4xf32>
    %10 = vector.shape_cast %9 : vector<1x256x4xf32> to vector<256x4xf32>
    %11 = vector.shape_cast %8 : vector<256x4xf32> to vector<1x256x4xf32>
    tpu.vector_store %arg5[%c0_8, %c0_9, %c0_10], %11 {strides = array<i32>} : memref<1x256x4xf32, #tpu.memory_space<vmem>>, vector<1x256x4xf32>,
    %cst_11 = arith.constant 5.000000e-01 : f32
    %12 = vector.broadcast %cst_11 : f32 to vector<256x4xf32>
    %13 = arith.mulf %12, %8 : vector<256x4xf32>
    %14 = math.tanh %13 : vector<256x4xf32>
    %cst_12 = arith.constant 1.000000e+00 : f32
    %15 = vector.broadcast %cst_12 : f32 to vector<256x4xf32>
    %16 = arith.addf %14, %15 : vector<256x4xf32>
    %cst_13 = arith.constant 5.000000e-01 : f32
    %17 = vector.broadcast %cst_13 : f32 to vector<256x4xf32>
    %18 = arith.mulf %17, %16 : vector<256x4xf32>
    %c0_14 = arith.constant 0 : index
    %c0_15 = arith.constant 0 : index
    %c0_16 = arith.constant 0 : index
    %19 = vector.load %arg6[%c0_14, %c0_15, %c0_16] : memref<1x256x4xf32, #tpu.memory_space<vmem>>, vector<1x256x4xf32>
    %20 = vector.shape_cast %19 : vector<1x256x4xf32> to vector<256x4xf32>
    %21 = vector.shape_cast %18 : vector<256x4xf32> to vector<1x256x4xf32>
    tpu.vector_store %arg6[%c0_14, %c0_15, %c0_16], %21 {strides = array<i32>} : memref<1x256x4xf32, #tpu.memory_space<vmem>>, vector<1x256x4xf32>,
    return
  }
  func.func @transform_0(%arg0: i32, %arg1: i32) -> (i32, i32, i32) {
    %c0_i32 = arith.constant 0 : i32
    %c0_i32_0 = arith.constant 0 : i32
    return %arg0, %arg1, %c0_i32 : i32, i32, i32
  }
  func.func @transform_1(%arg0: i32, %arg1: i32) -> (i32, i32, i32) {
    %c0_i32 = arith.constant 0 : i32
    %c0_i32_0 = arith.constant 0 : i32
    %c0_i32_1 = arith.constant 0 : i32
    %c0_i32_2 = arith.constant 0 : i32
    return %c0_i32, %c0_i32_0, %c0_i32_1 : i32, i32, i32
  }
  func.func @transform_2(%arg0: i32, %arg1: i32) -> (i32, i32, i32) {
    %c0_i32 = arith.constant 0 : i32
    %c0_i32_0 = arith.constant 0 : i32
    %c0_i32_1 = arith.constant 0 : i32
    %c0_i32_2 = arith.constant 0 : i32
    return %c0_i32, %c0_i32_0, %c0_i32_1 : i32, i32, i32
  }
  func.func @transform_3(%arg0: i32, %arg1: i32) -> (i32, i32, i32) {
    %c0_i32 = arith.constant 0 : i32
    %c0_i32_0 = arith.constant 0 : i32
    return %arg0, %arg1, %c0_i32 : i32, i32, i32
  }
  func.func @transform_4(%arg0: i32, %arg1: i32) -> (i32, i32, i32) {
    %c0_i32 = arith.constant 0 : i32
    %c0_i32_0 = arith.constant 0 : i32
    return %arg0, %arg1, %c0_i32 : i32, i32, i32
  }
}

</mosaic_0001>

<bundles_post_ra>
// kernel: _lambda_.6
= control target key start
LH: loop header
LB: loop body
LE: loop exit
PB: predicated region body
PF: predicated region fallthrough
CT: control target
= control target key end

     0   :  { %s658_s12 = smov 0   ;;  %s660_s13 = smov 0   ;;  %s735_s0 = inlined_call_operand.vmem [shape: bf16[2,64,64], index: 0, kind: input, shape index: {}]   ;;  %s736_s1 = inlined_call_operand.vmem [shape: bf16[1,64,8], index: 1, kind: input, shape index: {}]   ;;  %s737_s2 = inlined_call_operand.vmem [shape: f32[1,1,8], index: 2, kind: input, shape index: {}]   ;;  %s738_s3 = inlined_call_operand.vmem [shape: bf16[2,64,8], index: 3, kind: output, shape index: {}]  }
   0x1   :  { %s662_s14 = smov 0  }
   0x2 LB: > { %s25_s15 = sadd.s32 1, %s632_s13  ;;  %p512_p0 = scmp.ge.s32.totalorder %s636_s14, 1  ;;  %s636_s14 = sphi %s662_s14, %s13_s14   ;;  %s632_s13 = sphi %s660_s13, %s740_s13   ;;  %s628_s12 = sphi %s658_s12, %s739_s12  }
   0x3   : > { %p27_p1 = scmp.ge.s32.totalorder %s25_s15, 2  ;;  %p158_p2 = scmp.lt.s32.totalorder %s636_s14, 3 }
   0x5   : > { %s742_s15 = smov (%p27_p1, %s25_s15), 0  ;;  %p159_p3 = pnand %p512_p0, %p158_p2 }
   0x6   : > { %p191_p4 = scmp.lt.s32.totalorder (!%p159_p3), %s628_s12, 1 }
   0x7   : > { %162 = sbr.rel (%p159_p3) target bundleno = 238 (0xee), region = 32 }
   0xc   : > { %v606_v0 = vld [vmem:[%s736_s1 + $0x18] sm:$0xff]   ;;  %v607_v1 = vld [vmem:[%s736_s1 + $0x10] sm:$0xff]   ;;  %s744_s12 = smov (!%p191_p4, %s628_s12), 1  ;;  %v608_v2 = vld [vmem:[%s736_s1 + $0x8] sm:$0xff]   ;;  %vm278_vm0 = vcmask 523264   ;;  %vm412_vm3 = vcmask 60416  }
   0xd   : > { %558 = vmatprep.subr.bf16.mxu0 %v606_v0  ;;  %574 = vmatprep.subr.bf16.mxu1 %v606_v0  ;;  %s540_s22 = sshll.u32 %s744_s12, 5  ;;  %v609_v5 = vld [vmem:[%s736_s1] sm:$0xff]  }
   0xe   : > { %559 = vmatpush3.bf16.msra.mxu0 %v606_v0  ;;  %578 = vmatpush3.bf16.msra.mxu1 %v606_v0  ;;  %s198_s25 = scalar_lea.vmem %s735_s0, %s540_s22  ;;  %v517_v8 = vld [vmem:[%s737_s2] ss:$0 sm:$0xff]  ;;  %s708_s5 = scalar_lea.vmem %s738_s3, %s540_s22 }
   0xf   : > { %560 = vmatprep.subr.bf16.mxu0 %v607_v1  ;;  %575 = vmatprep.subr.bf16.mxu1 %v607_v1  ;;  %v610_v3 = vld [vmem:[%s198_s25] sm:$0xff]   ;;  %v611_v4 = vld [vmem:[%s198_s25 + $0x10] sm:$0xff]   ;;  %v612_v6 = vld [vmem:[%s198_s25 + $0x8] sm:$0xff]  }
  0x10   : > { %566 = vmatprep.mubr.msk.bf16.mxu0 %vm278_vm0, %v610_v3  ;;  %570 = vmatprep.mubr.msk.bf16.mxu1 %vm278_vm0, %v611_v4  ;;  %v613_v7 = vld [vmem:[%s198_s25 + $0x18] sm:$0xff]  }
  0x12   : > { %561 = vmatpush3.bf16.msra.mxu0 %v607_v1  ;;  %579 = vmatpush3.bf16.msra.mxu1 %v607_v1 }
  0x13   : > { %562 = vmatprep.subr.bf16.mxu0 %v608_v2  ;;  %576 = vmatprep.subr.bf16.mxu1 %v608_v2 }
  0x16   : > { %563 = vmatpush3.bf16.msra.mxu0 %v608_v2  ;;  %580 = vmatpush3.bf16.msra.mxu1 %v608_v2 }
  0x17   : > { %564 = vmatprep.subr.bf16.mxu0 %v609_v5  ;;  %577 = vmatprep.subr.bf16.mxu1 %v609_v5 }
  0x1a   : > { %565 = vmatpush3.bf16.msra.mxu0 %v609_v5  ;;  %581 = vmatpush3.bf16.msra.mxu1 %v609_v5 }
  0x1d   : > { %567 = vmatmul.mubr.msk.bf16.vlgmr.msra.gmra.mxu0 %vm278_vm0, %v612_v6  ;;  %571 = vmatmul.mubr.msk.bf16.vlgmr.msra.gmra.mxu1 %vm278_vm0, %v613_v7 }
  0xdd   : > { %v568_v9 = vpop.f32.mrf.mxu0  ;;  %v572_v10 = vpop.f32.mrf.mxu1 }
  0xde   : > { %v334_v11 = vadd.f32 %v568_v9, %v517_v8  ;;  %v350_v12 = vadd.f32 %v572_v10, %v517_v8 }
  0xdf   : > { %v325_v13 = vpop.f32.mrf.mxu0  ;;  %v341_v14 = vpop.f32.mrf.mxu1 }
  0xe0   : > { %vm358_vm1 = vcmp.gt.f32.partialorder %v334_v11, 0.0  ;;  %v366_v15 = vmul.f32 0.2, %v334_v11  ;;  %vm362_vm2 = vcmp.gt.f32.partialorder %v350_v12, 0.0  ;;  %v370_v16 = vmul.f32 0.2, %v350_v12 }
  0xe1   : > { %v326_v17 = vadd.f32 %v517_v8, %v325_v13  ;;  %v342_v18 = vadd.f32 %v517_v8, %v341_v14  ;;  %v569_v19 = vpop.f32.mrf.mxu0  ;;  %v573_v20 = vpop.f32.mrf.mxu1 }
  0xe2   : > { %v374_v21 = vsel %vm358_vm1, %v334_v11, %v366_v15  ;;  %v378_v22 = vsel %vm362_vm2, %v350_v12, %v370_v16  ;;  %v337_v23 = vadd.f32 %v569_v19, %v517_v8  ;;  %v353_v24 = vadd.f32 %v573_v20, %v517_v8 }
  0xe3   : > { %v544_v25 = vpack.c.bf16 %v374_v21, %v374_v21  ;;  %v548_v26 = vpack.c.bf16 %v378_v22, %v378_v22  ;;  %vm356_vm4 = vcmp.gt.f32.partialorder %v326_v17, 0.0  ;;  %v364_v27 = vmul.f32 0.2, %v326_v17  ;;  %v328_v28 = vpop.f32.mrf.mxu0  ;;  %v344_v29 = vpop.f32.mrf.mxu1 }
  0xe4   : > { %vm360_vm5 = vcmp.gt.f32.partialorder %v342_v18, 0.0  ;;  %v368_v30 = vmul.f32 0.2, %v342_v18  ;;  %vm359_vm6 = vcmp.gt.f32.partialorder %v337_v23, 0.0  ;;  %v367_v31 = vmul.f32 0.2, %v337_v23 }
  0xe5   : > { %415 = vst.msk [vmem:[%s708_s5 + $0x8] sm:$0xf] %vm412_vm3, %v544_v25  ;;  %419 = vst.msk [vmem:[%s708_s5 + $0x18] sm:$0xf] %vm412_vm3, %v548_v26  ;;  %v372_v32 = vsel %vm356_vm4, %v326_v17, %v364_v27  ;;  %vm363_vm7 = vcmp.gt.f32.partialorder %v353_v24, 0.0  ;;  %v329_v34 = vadd.f32 %v517_v8, %v328_v28  ;;  %v345_v38 = vadd.f32 %v517_v8, %v344_v29 }
  0xe6   : > { %v371_v33 = vmul.f32 0.2, %v353_v24  ;;  %v542_v35 = vpack.c.bf16 %v372_v32, %v372_v32  ;;  %v376_v36 = vsel %vm360_vm5, %v342_v18, %v368_v30  ;;  %v375_v37 = vsel %vm359_vm6, %v337_v23, %v367_v31 }
  0xe7   : > { %v546_v39 = vpack.c.bf16 %v376_v36, %v376_v36  ;;  %v545_v40 = vpack.c.bf16 %v375_v37, %v375_v37  ;;  %vm357_vm8 = vcmp.gt.f32.partialorder %v329_v34, 0.0  ;;  %v365_v43 = vmul.f32 0.2, %v329_v34 }
  0xe8   : > { %v379_v41 = vsel %vm363_vm7, %v353_v24, %v371_v33  ;;  %413 = vst.msk [vmem:[%s708_s5] sm:$0xf] %vm412_vm3, %v542_v35  ;;  %vm361_vm9 = vcmp.gt.f32.partialorder %v345_v38, 0.0  ;;  %v369_v44 = vmul.f32 0.2, %v345_v38 }
  0xe9   : > { %v549_v42 = vpack.c.bf16 %v379_v41, %v379_v41  ;;  %417 = vst.msk [vmem:[%s708_s5 + $0x10] sm:$0xf] %vm412_vm3, %v546_v39  ;;  %416 = vst.msk [vmem:[%s708_s5 + $0xc] sm:$0xf] %vm412_vm3, %v545_v40  ;;  %v373_v45 = vsel %vm357_vm8, %v329_v34, %v365_v43 }
  0xea   : > { %v377_v46 = vsel %vm361_vm9, %v345_v38, %v369_v44  ;;  %v543_v47 = vpack.c.bf16 %v373_v45, %v373_v45 }
  0xeb   : > { %420 = vst.msk [vmem:[%s708_s5 + $0x1c] sm:$0xf] %vm412_vm3, %v549_v42  ;;  %v547_v48 = vpack.c.bf16 %v377_v46, %v377_v46 }
  0xec   : > { %414 = vst.msk [vmem:[%s708_s5 + $0x4] sm:$0xf] %vm412_vm3, %v543_v47 }
  0xed   : > { %418 = vst.msk [vmem:[%s708_s5 + $0x14] sm:$0xf] %vm412_vm3, %v547_v48 }
  0xee PF: > { %s13_s14 = sadd.s32 1, %s636_s14   ;;  %s739_s12 = smov %s632_s13 }
  0xef   : > { %p10_p5 = scmp.ge.s32.totalorder %s13_s14, 4   ;;  %s740_s13 = smov %s742_s15 }
  0xf1   :  { %12 = sbr.rel (!%p10_p5) target bundleno = 2 (0x2), region = 62 }

// kernel: _lambda_.7
= control target key start
LH: loop header
LB: loop body
LE: loop exit
PB: predicated region body
PF: predicated region fallthrough
CT: control target
= control target key end

     0   :  { %s572_s12 = smov 0   ;;  %s574_s13 = smov 0   ;;  %s635_s0 = inlined_call_operand.vmem [shape: bf16[2,16,128], index: 0, kind: input, shape index: {}]   ;;  %s636_s1 = inlined_call_operand.vmem [shape: bf16[1,128,16], index: 1, kind: input, shape index: {}]   ;;  %s637_s2 = inlined_call_operand.vmem [shape: f32[1,1,16], index: 2, kind: input, shape index: {}]   ;;  %s638_s3 = inlined_call_operand.vmem [shape: bf16[2,16,16], index: 3, kind: output, shape index: {}]  }
   0x1   :  { %s576_s14 = smov 0  }
   0x2 LB: > { %s25_s15 = sadd.s32 1, %s544_s13  ;;  %p439_p0 = scmp.ge.s32.totalorder %s548_s14, 1  ;;  %s548_s14 = sphi %s576_s14, %s13_s14   ;;  %s544_s13 = sphi %s574_s13, %s640_s13   ;;  %s540_s12 = sphi %s572_s12, %s639_s12  }
   0x3   : > { %p27_p1 = scmp.ge.s32.totalorder %s25_s15, 2  ;;  %p158_p2 = scmp.lt.s32.totalorder %s548_s14, 3 }
   0x5   : > { %s642_s15 = smov (%p27_p1, %s25_s15), 0  ;;  %p159_p3 = pnand %p439_p0, %p158_p2 }
   0x6   : > { %p191_p4 = scmp.lt.s32.totalorder (!%p159_p3), %s540_s12, 1 }
   0x7   : > { %162 = sbr.rel (%p159_p3) target bundleno = 250 (0xfa), region = 32 }
   0xc   : > { %v517_v0 = vld [vmem:[%s636_s1 + $0x38] sm:$0xff]   ;;  %v550_v1 = vmov 0.0   ;;  %v518_v2 = vld [vmem:[%s636_s1 + $0x30] sm:$0xff]   ;;  %vm551_vm0 = vmmov 0   ;;  %s644_s12 = smov (!%p191_p4, %s540_s12), 1  ;;  %v519_v3 = vld [vmem:[%s636_s1 + $0x28] sm:$0xff]  }
   0xd   : > { %471 = vmatprep.subr.bf16.mxu0 %v550_v1  ;;  %487 = vmatprep.mubr.msk.bf16.mxu0 %vm551_vm0, %v550_v1  ;;  %s458_s22 = sshll.u32 %s644_s12, 3  ;;  %v520_v4 = vld [vmem:[%s636_s1 + $0x20] sm:$0xff]   ;;  %v521_v5 = vld [vmem:[%s636_s1 + $0x18] sm:$0xff]   ;;  %v522_v6 = vld [vmem:[%s636_s1 + $0x10] sm:$0xff]   ;;  %vm345_vm2 = vcmask 125952  }
   0xe   : > { %472 = vmatpush3.bf16.msra.mxu0 %v517_v0  ;;  %s198_s25 = scalar_lea.vmem %s635_s0, %s458_s22  ;;  %v523_v7 = vld [vmem:[%s636_s1 + $0x8] sm:$0xff]   ;;  %v524_v8 = vld [vmem:[%s636_s1] sm:$0xff]   ;;  %s208_s16 = scalar_lea.vmem %s638_s3, %s458_s22 }
   0xf   : > { %473 = vmatprep.subr.bf16.mxu0 %v550_v1  ;;  %v525_v9 = vld [vmem:[%s198_s25] sm:$0xff]  }
  0x10   : > { %v444_v10 = vld [vmem:[%s637_s2] ss:$0 sm:$0xff] }
  0x12   : > { %474 = vmatpush3.bf16.msra.mxu0 %v518_v2 }
  0x13   : > { %475 = vmatprep.subr.bf16.mxu0 %v550_v1 }
  0x16   : > { %476 = vmatpush3.bf16.msra.mxu0 %v519_v3 }
  0x17   : > { %477 = vmatprep.subr.bf16.mxu0 %v550_v1 }
  0x1a   : > { %478 = vmatpush3.bf16.msra.mxu0 %v520_v4 }
  0x1b   : > { %479 = vmatprep.subr.bf16.mxu0 %v550_v1 }
  0x1e   : > { %480 = vmatpush3.bf16.msra.mxu0 %v521_v5 }
  0x1f   : > { %481 = vmatprep.subr.bf16.mxu0 %v550_v1 }
  0x22   : > { %482 = vmatpush3.bf16.msra.mxu0 %v522_v6 }
  0x23   : > { %483 = vmatprep.subr.bf16.mxu0 %v550_v1 }
  0x26   : > { %484 = vmatpush3.bf16.msra.mxu0 %v523_v7 }
  0x27   : > { %485 = vmatprep.subr.bf16.mxu0 %v550_v1 }
  0x2a   : > { %486 = vmatpush3.bf16.msra.mxu0 %v524_v8 }
  0x2d   : > { %488 = vmatmul.mubr.bf16.vlgmr.msra.gmra.mxu0 %v525_v9 }
  0xed   : > { %v324_v11 = vpop.f32.mrf.mxu0 }
  0xee   : > { %v325_v12 = vadd.f32 %v444_v10, %v324_v11 }
  0xef   : > { %v489_v13 = vpop.f32.mrf.mxu0 }
  0xf0   : > { %vm331_vm1 = vcmp.gt.f32.partialorder %v325_v12, 0.0  ;;  %v333_v14 = vmul.f32 0.2, %v325_v12 }
  0xf1   : > { %v327_v15 = vpop.f32.mrf.mxu0 }
  0xf2   : > { %v335_v16 = vsel %vm331_vm1, %v325_v12, %v333_v14  ;;  %v328_v17 = vadd.f32 %v444_v10, %v327_v15 }
  0xf3   : > { %v460_v18 = vpack.c.bf16 %v335_v16, %v335_v16  ;;  %v490_v19 = vpop.f32.mrf.mxu0 }
  0xf4   : > { %vm332_vm3 = vcmp.gt.f32.partialorder %v328_v17, 0.0  ;;  %v334_v20 = vmul.f32 0.2, %v328_v17 }
  0xf5   : > { %346 = vst.msk [vmem:[%s208_s16] sm:$0xf] %vm345_vm2, %v460_v18 }
  0xf6   : > { %v336_v21 = vsel %vm332_vm3, %v328_v17, %v334_v20 }
  0xf7   : > { %v461_v22 = vpack.c.bf16 %v336_v21, %v336_v21 }
  0xf9   : > { %347 = vst.msk [vmem:[%s208_s16 + $0x4] sm:$0xf] %vm345_vm2, %v461_v22 }
  0xfa PF: > { %s13_s14 = sadd.s32 1, %s548_s14   ;;  %s639_s12 = smov %s544_s13 }
  0xfb   : > { %p10_p5 = scmp.ge.s32.totalorder %s13_s14, 4   ;;  %s640_s13 = smov %s642_s15 }
  0xfd   :  { %12 = sbr.rel (!%p10_p5) target bundleno = 2 (0x2), region = 62 }

// kernel: _lambda_.8
= control target key start
LH: loop header
LB: loop body
LE: loop exit
PB: predicated region body
PF: predicated region fallthrough
CT: control target
= control target key end

     0   :  { %s467_s12 = smov 0   ;;  %s469_s13 = smov 0   ;;  %s506_s0 = inlined_call_operand.vmem [shape: bf16[2,16,16], index: 0, kind: input, shape index: {}]   ;;  %s507_s1 = inlined_call_operand.vmem [shape: bf16[1,16,32], index: 1, kind: input, shape index: {}]   ;;  %s508_s2 = inlined_call_operand.vmem [shape: f32[1,1,32], index: 2, kind: input, shape index: {}]   ;;  %s509_s3 = inlined_call_operand.vmem [shape: f32[2,16,32], index: 3, kind: output, shape index: {}]  }
   0x1   :  { %s471_s14 = smov 0  }
   0x2 LB: > { %s25_s15 = sadd.s32 1, %s439_s13  ;;  %p372_p0 = scmp.ge.s32.totalorder %s443_s14, 1  ;;  %s443_s14 = sphi %s471_s14, %s13_s14   ;;  %s439_s13 = sphi %s469_s13, %s511_s13   ;;  %s435_s12 = sphi %s467_s12, %s510_s12  }
   0x3   : > { %p27_p1 = scmp.ge.s32.totalorder %s25_s15, 2  ;;  %p158_p2 = scmp.lt.s32.totalorder %s443_s14, 3 }
   0x5   : > { %s513_s15 = smov (%p27_p1, %s25_s15), 0  ;;  %p159_p3 = pnand %p372_p0, %p158_p2 }
   0x6   : > { %p191_p4 = scmp.lt.s32.totalorder (!%p159_p3), %s435_s12, 1 }
   0x7   : > { %162 = sbr.rel (%p159_p3) target bundleno = 217 (0xd9), region = 32 }
   0xc   : > { %v419_v0 = vld [vmem:[%s507_s1] sm:$0xff]   ;;  %v445_v1 = vmov 0.0   ;;  %vm446_vm0 = vmmov 0   ;;  %s515_s12 = smov (!%p191_p4, %s435_s12), 1  ;;  %vm233_vm1 = vcmask 130048   ;;  %vm278_vm2 = vcmask 261120  }
   0xd   : > { %387 = vmatprep.subr.bf16.mxu0 %v445_v1  ;;  %389 = vmatprep.mubr.msk.bf16.mxu0 %vm446_vm0, %v445_v1  ;;  %s383_s18 = sshll.u32 %s515_s12, 3  ;;  %s384_s22 = sshll.u32 %s515_s12, 4  ;;  %v377_v3 = vld [vmem:[%s508_s2] ss:$0 sm:$0xff] }
   0xe   : > { %388 = vmatpush3.bf16.msra.mxu0 %v419_v0  ;;  %s198_s21 = scalar_lea.vmem %s506_s0, %s383_s18  ;;  %s208_s27 = scalar_lea.vmem %s509_s3, %s384_s22 }
   0xf   : > { %v420_v2 = vld [vmem:[%s198_s21] sm:$0xff]  }
  0x11   : > { %390 = vmatmul.mubr.msk.bf16.vlgmr.msra.gmra.mxu0 %vm233_vm1, %v420_v2 }
  0xd1   : > { %v271_v4 = vpop.f32.mrf.mxu0 }
  0xd2   : > { %v272_v5 = vadd.f32 %v377_v3, %v271_v4 }
  0xd3   : > { %v391_v6 = vpop.f32.mrf.mxu0 }
  0xd4   : > { %279 = vst.msk [vmem:[%s208_s27] sm:$0xff] %vm278_vm2, %v272_v5 }
  0xd5   : > { %v274_v7 = vpop.f32.mrf.mxu0 }
  0xd6   : > { %v275_v8 = vadd.f32 %v377_v3, %v274_v7 }
  0xd7   : > { %v392_v9 = vpop.f32.mrf.mxu0 }
  0xd8   : > { %280 = vst.msk [vmem:[%s208_s27 + $0x8] sm:$0xff] %vm278_vm2, %v275_v8 }
  0xd9 PF: > { %s13_s14 = sadd.s32 1, %s443_s14   ;;  %s510_s12 = smov %s439_s13 }
  0xda   : > { %p10_p5 = scmp.ge.s32.totalorder %s13_s14, 4   ;;  %s511_s13 = smov %s513_s15 }
  0xdc   :  { %12 = sbr.rel (!%p10_p5) target bundleno = 2 (0x2), region = 62 }

// kernel: _lambda_.9
= control target key start
LH: loop header
LB: loop body
LE: loop exit
PB: predicated region body
PF: predicated region fallthrough
CT: control target
= control target key end

     0   :  { %s612_s12 = smov 0   ;;  %s614_s13 = smov 0   ;;  %s656_s0 = inlined_call_operand.vmem [shape: bf16[4,32,64], index: 0, kind: input, shape index: {}]   ;;  %s657_s1 = inlined_call_operand.vmem [shape: bf16[4,64,16], index: 1, kind: input, shape index: {}]   ;;  %s658_s2 = inlined_call_operand.vmem [shape: f32[4,1,16], index: 2, kind: input, shape index: {}]   ;;  %s659_s3 = inlined_call_operand.vmem [shape: bf16[4,32,16], index: 3, kind: output, shape index: {}]  }
   0x1   :  { %s616_s14 = smov 0  }
   0x2 LB: > { %s25_s15 = sadd.s32 1, %s586_s13  ;;  %p491_p0 = scmp.ge.s32.totalorder %s590_s14, 1  ;;  %s590_s14 = sphi %s616_s14, %s13_s14   ;;  %s586_s13 = sphi %s614_s13, %s661_s13   ;;  %s582_s12 = sphi %s612_s12, %s660_s12  }
   0x3   : > { %p27_p1 = scmp.ge.s32.totalorder %s25_s15, 4  ;;  %p176_p2 = scmp.lt.s32.totalorder %s590_s14, 5 }
   0x5   : > { %s663_s15 = smov (%p27_p1, %s25_s15), 0  ;;  %p177_p3 = pnand %p491_p0, %p176_p2 }
   0x6   : > { %p217_p4 = scmp.lt.s32.totalorder (!%p177_p3), %s582_s12, 3 }
   0x7   : > { %180 = sbr.rel (%p177_p3) target bundleno = 238 (0xee), region = 32 }
   0xc   : > { %s665_s12 = smov (!%p217_p4, %s582_s12), 3  ;;  %vm298_vm0 = vcmask 523264   ;;  %vm374_vm1 = vcmask 125952  }
   0xd   : > { %s514_s16 = sshll.u32 %s665_s12, 5  ;;  %s513_s17 = sshll.u32 %s665_s12, 4 }
   0xe   : > { %s230_s20 = scalar_lea.vmem %s657_s1, %s514_s16  ;;  %s224_s23 = scalar_lea.vmem %s656_s0, %s513_s17 }
   0xf   : > { %v562_v0 = vld [vmem:[%s230_s20 + $0x18] sm:$0xff]   ;;  %v563_v1 = vld [vmem:[%s230_s20 + $0x10] sm:$0xff]   ;;  %v564_v2 = vld [vmem:[%s230_s20 + $0x8] sm:$0xff]   ;;  %s233_s26 = scalar_lea.vmem %s658_s2, %s665_s12  ;;  %s242_s29 = scalar_lea.vmem %s659_s3, %s513_s17 }
  0x10   : > { %526 = vmatprep.subr.bf16.mxu0 %v562_v0  ;;  %v566_v3 = vld [vmem:[%s224_s23] sm:$0xff]   ;;  %v567_v5 = vld [vmem:[%s224_s23 + $0x8] sm:$0xff]  }
  0x11   : > { %527 = vmatpush3.bf16.msra.mxu0 %v562_v0  ;;  %534 = vmatprep.mubr.msk.bf16.mxu0 %vm298_vm0, %v566_v3  ;;  %v565_v4 = vld [vmem:[%s230_s20] sm:$0xff]  }
  0x12   : > { %528 = vmatprep.subr.bf16.mxu0 %v563_v1  ;;  %v498_v6 = vld [vmem:[%s233_s26] ss:$0 sm:$0xff] }
  0x15   : > { %529 = vmatpush3.bf16.msra.mxu0 %v563_v1 }
  0x16   : > { %530 = vmatprep.subr.bf16.mxu0 %v564_v2 }
  0x19   : > { %531 = vmatpush3.bf16.msra.mxu0 %v564_v2 }
  0x1a   : > { %532 = vmatprep.subr.bf16.mxu0 %v565_v4 }
  0x1d   : > { %533 = vmatpush3.bf16.msra.mxu0 %v565_v4 }
  0x20   : > { %535 = vmatmul.mubr.msk.bf16.vlgmr.msra.gmra.mxu0 %vm298_vm0, %v567_v5 }
  0xe0   : > { %v536_v7 = vpop.f32.mrf.mxu0 }
  0xe1   : > { %v348_v8 = vadd.f32 %v536_v7, %v498_v6 }
  0xe2   : > { %v339_v9 = vpop.f32.mrf.mxu0 }
  0xe3   : > { %v356_v10 = vmax.f32 %v348_v8, 0.0  ;;  %v340_v11 = vadd.f32 %v498_v6, %v339_v9 }
  0xe4   : > { %v537_v12 = vpop.f32.mrf.mxu0 }
  0xe5   : > { %v518_v13 = vpack.c.bf16 %v356_v10, %v356_v10  ;;  %v354_v14 = vmax.f32 %v340_v11, 0.0  ;;  %v351_v15 = vadd.f32 %v537_v12, %v498_v6 }
  0xe6   : > { %v342_v16 = vpop.f32.mrf.mxu0 }
  0xe7   : > { %377 = vst.msk [vmem:[%s242_s29 + $0x8] sm:$0xf] %vm374_vm1, %v518_v13  ;;  %v516_v17 = vpack.c.bf16 %v354_v14, %v354_v14  ;;  %v357_v18 = vmax.f32 %v351_v15, 0.0  ;;  %v343_v19 = vadd.f32 %v498_v6, %v342_v16 }
  0xe9   : > { %375 = vst.msk [vmem:[%s242_s29] sm:$0xf] %vm374_vm1, %v516_v17  ;;  %v519_v20 = vpack.c.bf16 %v357_v18, %v357_v18  ;;  %v355_v21 = vmax.f32 %v343_v19, 0.0 }
  0xeb   : > { %378 = vst.msk [vmem:[%s242_s29 + $0xc] sm:$0xf] %vm374_vm1, %v519_v20  ;;  %v517_v22 = vpack.c.bf16 %v355_v21, %v355_v21 }
  0xed   : > { %376 = vst.msk [vmem:[%s242_s29 + $0x4] sm:$0xf] %vm374_vm1, %v517_v22 }
  0xee PF: > { %s13_s14 = sadd.s32 1, %s590_s14   ;;  %s660_s12 = smov %s586_s13 }
  0xef   : > { %p10_p5 = scmp.ge.s32.totalorder %s13_s14, 6   ;;  %s661_s13 = smov %s663_s15 }
  0xf1   :  { %12 = sbr.rel (!%p10_p5) target bundleno = 2 (0x2), region = 68 }

// kernel: _lambda_.10
= control target key start
LH: loop header
LB: loop body
LE: loop exit
PB: predicated region body
PF: predicated region fallthrough
CT: control target
= control target key end

     0   :  { %s860_s12 = smov 0   ;;  %s862_s13 = smov 0   ;;  %s978_s0 = inlined_call_operand.vmem [shape: bf16[4,128,64], index: 0, kind: input, shape index: {}]   ;;  %s979_s1 = inlined_call_operand.vmem [shape: bf16[4,64,8], index: 1, kind: input, shape index: {}]   ;;  %s980_s2 = inlined_call_operand.vmem [shape: f32[4,1,8], index: 2, kind: input, shape index: {}]   ;;  %s981_s3 = inlined_call_operand.vmem [shape: bf16[4,128,8], index: 3, kind: output, shape index: {}]  }
   0x1   :  { %s864_s14 = smov 0  }
   0x2 LB: > { %s25_s15 = sadd.s32 1, %s834_s13  ;;  %p671_p0 = scmp.ge.s32.totalorder %s838_s14, 1  ;;  %s838_s14 = sphi %s864_s14, %s13_s14   ;;  %s834_s13 = sphi %s862_s13, %s983_s13   ;;  %s830_s12 = sphi %s860_s12, %s982_s12  }
   0x3   : > { %p27_p1 = scmp.ge.s32.totalorder %s25_s15, 4  ;;  %p176_p2 = scmp.lt.s32.totalorder %s838_s14, 5 }
   0x5   : > { %s985_s15 = smov (%p27_p1, %s25_s15), 0  ;;  %p177_p3 = pnand %p671_p0, %p176_p2 }
   0x6   : > { %p217_p4 = scmp.lt.s32.totalorder (!%p177_p3), %s830_s12, 3 }
   0x7   : > { %180 = sbr.rel (%p177_p3) target bundleno = 246 (0xf6), region = 32 }
   0xc   : > { %s987_s12 = smov (!%p217_p4, %s830_s12), 3  ;;  %vm340_vm0 = vcmask 523264   ;;  %vm542_vm1 = vcmask 60416  }
   0xd   : > { %s718_s16 = sshll.u32 %s987_s12, 5  ;;  %s717_s17 = sshll.u32 %s987_s12, 6 }
   0xe   : > { %s230_s20 = scalar_lea.vmem %s979_s1, %s718_s16  ;;  %s890_s23 = scalar_lea.vmem %s978_s0, %s717_s17 }
   0xf   : > { %v804_v0 = vld [vmem:[%s230_s20 + $0x18] sm:$0xff]   ;;  %v805_v1 = vld [vmem:[%s230_s20 + $0x10] sm:$0xff]   ;;  %v806_v2 = vld [vmem:[%s230_s20 + $0x8] sm:$0xff]   ;;  %s233_s26 = scalar_lea.vmem %s980_s2, %s987_s12  ;;  %s923_s29 = scalar_lea.vmem %s981_s3, %s717_s17 }
  0x10   : > { %748 = vmatprep.subr.bf16.mxu0 %v804_v0  ;;  %772 = vmatprep.subr.bf16.mxu1 %v804_v0  ;;  %v808_v3 = vld [vmem:[%s890_s23] sm:$0xff]   ;;  %v810_v6 = vld [vmem:[%s890_s23 + $0x8] sm:$0xff]   ;;  %v812_v8 = vld [vmem:[%s890_s23 + $0x10] sm:$0xff]  }
  0x11   : > { %749 = vmatpush3.bf16.msra.mxu0 %v804_v0  ;;  %776 = vmatpush3.bf16.msra.mxu1 %v804_v0  ;;  %v809_v4 = vld [vmem:[%s890_s23 + $0x20] sm:$0xff]   ;;  %v811_v7 = vld [vmem:[%s890_s23 + $0x28] sm:$0xff]   ;;  %v813_v9 = vld [vmem:[%s890_s23 + $0x30] sm:$0xff]  }
  0x12   : > { %750 = vmatprep.subr.bf16.mxu0 %v805_v1  ;;  %773 = vmatprep.subr.bf16.mxu1 %v805_v1  ;;  %v807_v5 = vld [vmem:[%s230_s20] sm:$0xff]   ;;  %v814_v10 = vld [vmem:[%s890_s23 + $0x18] sm:$0xff]  }
  0x13   : > { %756 = vmatprep.mubr.msk.bf16.mxu0 %vm340_vm0, %v808_v3  ;;  %764 = vmatprep.mubr.msk.bf16.mxu1 %vm340_vm0, %v809_v4  ;;  %v815_v11 = vld [vmem:[%s890_s23 + $0x38] sm:$0xff]   ;;  %v912_v12 = vld [vmem:[%s233_s26] ss:$0 sm:$0xff] }
  0x15   : > { %751 = vmatpush3.bf16.msra.mxu0 %v805_v1  ;;  %777 = vmatpush3.bf16.msra.mxu1 %v805_v1 }
  0x16   : > { %752 = vmatprep.subr.bf16.mxu0 %v806_v2  ;;  %774 = vmatprep.subr.bf16.mxu1 %v806_v2 }
  0x19   : > { %753 = vmatpush3.bf16.msra.mxu0 %v806_v2  ;;  %778 = vmatpush3.bf16.msra.mxu1 %v806_v2 }
  0x1a   : > { %754 = vmatprep.subr.bf16.mxu0 %v807_v5  ;;  %775 = vmatprep.subr.bf16.mxu1 %v807_v5 }
  0x1d   : > { %755 = vmatpush3.bf16.msra.mxu0 %v807_v5  ;;  %779 = vmatpush3.bf16.msra.mxu1 %v807_v5 }
  0x20   : > { %757 = vmatmul.mubr.msk.bf16.vlgmr.msra.gmra.mxu0 %vm340_vm0, %v810_v6  ;;  %765 = vmatmul.mubr.msk.bf16.vlgmr.msra.gmra.mxu1 %vm340_vm0, %v811_v7 }
  0x21   : > { %760 = vmatprep.mubr.msk.bf16.mxu0 %vm340_vm0, %v812_v8  ;;  %768 = vmatprep.mubr.msk.bf16.mxu1 %vm340_vm0, %v813_v9 }
  0x28   : > { %761 = vmatmul.mubr.msk.bf16.gmra.mxu0 %vm340_vm0, %v814_v10  ;;  %769 = vmatmul.mubr.msk.bf16.gmra.mxu1 %vm340_vm0, %v815_v11 }
  0xe0   : > { %v758_v13 = vpop.f32.mrf.mxu0  ;;  %v766_v14 = vpop.f32.mrf.mxu1 }
  0xe1   : > { %v408_v15 = vadd.f32 %v758_v13, %v912_v12  ;;  %v440_v16 = vadd.f32 %v766_v14, %v912_v12 }
  0xe2   : > { %v399_v17 = vpop.f32.mrf.mxu0  ;;  %v431_v18 = vpop.f32.mrf.mxu1 }
  0xe3   : > { %v464_v19 = vmax.f32 %v408_v15, 0.0  ;;  %v472_v20 = vmax.f32 %v440_v16, 0.0  ;;  %v400_v21 = vadd.f32 %v912_v12, %v399_v17  ;;  %v432_v22 = vadd.f32 %v912_v12, %v431_v18 }
  0xe4   : > { %v759_v23 = vpop.f32.mrf.mxu0  ;;  %v767_v24 = vpop.f32.mrf.mxu1 }
  0xe5   : > { %v722_v25 = vpack.c.bf16 %v464_v19, %v464_v19  ;;  %v730_v26 = vpack.c.bf16 %v472_v20, %v472_v20  ;;  %v462_v27 = vmax.f32 %v400_v21, 0.0  ;;  %v470_v28 = vmax.f32 %v432_v22, 0.0 }
  0xe6   : > { %v411_v29 = vadd.f32 %v759_v23, %v912_v12  ;;  %v443_v30 = vadd.f32 %v767_v24, %v912_v12  ;;  %v402_v31 = vpop.f32.mrf.mxu0  ;;  %v434_v32 = vpop.f32.mrf.mxu1 }
  0xe7   : > { %545 = vst.msk [vmem:[%s923_s29 + $0x8] sm:$0xf] %vm542_vm1, %v722_v25  ;;  %553 = vst.msk [vmem:[%s923_s29 + $0x28] sm:$0xf] %vm542_vm1, %v730_v26  ;;  %v720_v33 = vpack.c.bf16 %v462_v27, %v462_v27  ;;  %v728_v34 = vpack.c.bf16 %v470_v28, %v470_v28  ;;  %v403_v35 = vadd.f32 %v912_v12, %v402_v31 }
  0xe8   : > { %v435_v36 = vadd.f32 %v912_v12, %v434_v32  ;;  %v465_v37 = vmax.f32 %v411_v29, 0.0  ;;  %v473_v38 = vmax.f32 %v443_v30, 0.0  ;;  %v762_v39 = vpop.f32.mrf.mxu0  ;;  %v770_v40 = vpop.f32.mrf.mxu1 }
  0xe9   : > { %543 = vst.msk [vmem:[%s923_s29] sm:$0xf] %vm542_vm1, %v720_v33  ;;  %551 = vst.msk [vmem:[%s923_s29 + $0x20] sm:$0xf] %vm542_vm1, %v728_v34  ;;  %v463_v41 = vmax.f32 %v403_v35, 0.0  ;;  %v424_v43 = vadd.f32 %v762_v39, %v912_v12  ;;  %v456_v44 = vadd.f32 %v770_v40, %v912_v12 }
  0xea   : > { %v471_v42 = vmax.f32 %v435_v36, 0.0  ;;  %v723_v45 = vpack.c.bf16 %v465_v37, %v465_v37  ;;  %v731_v46 = vpack.c.bf16 %v473_v38, %v473_v38  ;;  %v415_v47 = vpop.f32.mrf.mxu0  ;;  %v447_v48 = vpop.f32.mrf.mxu1 }
  0xeb   : > { %v721_v49 = vpack.c.bf16 %v463_v41, %v463_v41  ;;  %v468_v51 = vmax.f32 %v424_v43, 0.0  ;;  %v476_v52 = vmax.f32 %v456_v44, 0.0  ;;  %v416_v53 = vadd.f32 %v912_v12, %v415_v47 }
  0xec   : > { %v729_v50 = vpack.c.bf16 %v471_v42, %v471_v42  ;;  %546 = vst.msk [vmem:[%s923_s29 + $0xc] sm:$0xf] %vm542_vm1, %v723_v45  ;;  %554 = vst.msk [vmem:[%s923_s29 + $0x2c] sm:$0xf] %vm542_vm1, %v731_v46  ;;  %v448_v54 = vadd.f32 %v912_v12, %v447_v48  ;;  %v763_v55 = vpop.f32.mrf.mxu0  ;;  %v771_v56 = vpop.f32.mrf.mxu1 }
  0xed   : > { %544 = vst.msk [vmem:[%s923_s29 + $0x4] sm:$0xf] %vm542_vm1, %v721_v49  ;;  %v726_v57 = vpack.c.bf16 %v468_v51, %v468_v51  ;;  %v734_v58 = vpack.c.bf16 %v476_v52, %v476_v52  ;;  %v427_v59 = vadd.f32 %v763_v55, %v912_v12  ;;  %v459_v60 = vadd.f32 %v771_v56, %v912_v12 }
  0xee   : > { %552 = vst.msk [vmem:[%s923_s29 + $0x24] sm:$0xf] %vm542_vm1, %v729_v50  ;;  %v466_v61 = vmax.f32 %v416_v53, 0.0  ;;  %v474_v62 = vmax.f32 %v448_v54, 0.0  ;;  %v418_v63 = vpop.f32.mrf.mxu0  ;;  %v450_v0 = vpop.f32.mrf.mxu1 }
  0xef   : > { %549 = vst.msk [vmem:[%s923_s29 + $0x18] sm:$0xf] %vm542_vm1, %v726_v57  ;;  %557 = vst.msk [vmem:[%s923_s29 + $0x38] sm:$0xf] %vm542_vm1, %v734_v58  ;;  %v469_v1 = vmax.f32 %v427_v59, 0.0  ;;  %v477_v2 = vmax.f32 %v459_v60, 0.0  ;;  %v419_v3 = vadd.f32 %v912_v12, %v418_v63  ;;  %v451_v4 = vadd.f32 %v912_v12, %v450_v0 }
  0xf0   : > { %v724_v5 = vpack.c.bf16 %v466_v61, %v466_v61  ;;  %v732_v6 = vpack.c.bf16 %v474_v62, %v474_v62 }
  0xf1   : > { %v727_v7 = vpack.c.bf16 %v469_v1, %v469_v1  ;;  %v735_v8 = vpack.c.bf16 %v477_v2, %v477_v2  ;;  %v467_v9 = vmax.f32 %v419_v3, 0.0  ;;  %v475_v10 = vmax.f32 %v451_v4, 0.0 }
  0xf2   : > { %547 = vst.msk [vmem:[%s923_s29 + $0x10] sm:$0xf] %vm542_vm1, %v724_v5  ;;  %555 = vst.msk [vmem:[%s923_s29 + $0x30] sm:$0xf] %vm542_vm1, %v732_v6 }
  0xf3   : > { %550 = vst.msk [vmem:[%s923_s29 + $0x1c] sm:$0xf] %vm542_vm1, %v727_v7  ;;  %558 = vst.msk [vmem:[%s923_s29 + $0x3c] sm:$0xf] %vm542_vm1, %v735_v8  ;;  %v725_v11 = vpack.c.bf16 %v467_v9, %v467_v9  ;;  %v733_v13 = vpack.c.bf16 %v475_v10, %v475_v10 }
  0xf5   : > { %548 = vst.msk [vmem:[%s923_s29 + $0x14] sm:$0xf] %vm542_vm1, %v725_v11  ;;  %556 = vst.msk [vmem:[%s923_s29 + $0x34] sm:$0xf] %vm542_vm1, %v733_v13 }
  0xf6 PF: > { %s13_s14 = sadd.s32 1, %s838_s14   ;;  %s982_s12 = smov %s834_s13 }
  0xf7   : > { %p10_p5 = scmp.ge.s32.totalorder %s13_s14, 6   ;;  %s983_s13 = smov %s985_s15 }
  0xf9   :  { %12 = sbr.rel (!%p10_p5) target bundleno = 2 (0x2), region = 68 }

// kernel: _lambda_.11
= control target key start
LH: loop header
LB: loop body
LE: loop exit
PB: predicated region body
PF: predicated region fallthrough
CT: control target
= control target key end

     0   :  { %s1248_s15 = smov 0   ;;  %s1250_s16 = smov 0   ;;  %s1510_s0 = inlined_call_operand.vmem [shape: bf16[2,256,72], index: 0, kind: input, shape index: {}]   ;;  %s1511_s1 = inlined_call_operand.vmem [shape: bf16[1,72,4], index: 1, kind: input, shape index: {}]   ;;  %s1512_s2 = inlined_call_operand.vmem [shape: f32[1,1,4], index: 2, kind: input, shape index: {}]   ;;  %s1513_s3 = inlined_call_operand.vmem [shape: f32[2,256,4], index: 3, kind: output, shape index: {0}]   ;;  %s1514_s4 = inlined_call_operand.vmem [shape: f32[2,256,4], index: 4, kind: output, shape index: {1}]  }
   0x1   :  { %s1252_s17 = smov 0  }
   0x2 LB: > { %s27_s18 = sadd.s32 1, %s1217_s16  ;;  %p965_p0 = scmp.ge.s32.totalorder %s1221_s17, 1  ;;  %s1221_s17 = sphi %s1252_s17, %s15_s17   ;;  %s1217_s16 = sphi %s1250_s16, %s1516_s16   ;;  %s1213_s15 = sphi %s1248_s15, %s1515_s15  }
   0x3   : > { %p29_p1 = scmp.ge.s32.totalorder %s27_s18, 2  ;;  %p188_p2 = scmp.lt.s32.totalorder %s1221_s17, 3 }
   0x5   : > { %s1518_s18 = smov (%p29_p1, %s27_s18), 0  ;;  %p189_p3 = pnand %p965_p0, %p188_p2 }
   0x6   : > { %p232_p4 = scmp.lt.s32.totalorder (!%p189_p3), %s1213_s15, 1 }
   0x7   : > { %192 = sbr.rel (%p189_p3) target bundleno = 286 (0x11e), region = 32 }
   0xc   : > { %v1114_v0 = vld [vmem:[%s1511_s1 + $0x20] ss:$0 sps:$4 sm:$0xff]   ;;  %vm466_vm0 = vcmask 1043456   ;;  %v1115_v1 = vld [vmem:[%s1511_s1 + $0x18] sm:$0xff]   ;;  %v1116_v3 = vld [vmem:[%s1511_s1 + $0x10] sm:$0xff]   ;;  %s1520_s15 = smov (!%p232_p4, %s1213_s15), 1 }
   0xd   : > { %1088 = vmatprep.subr.msk.bf16.mxu0 %vm466_vm0, %v1114_v0  ;;  %1089 = vmatprep.subr.msk.bf16.mxu1 %vm466_vm0, %v1114_v0  ;;  %v468_v2 = vsel %vm466_vm0, %v1114_v0, 0  ;;  %s1012_s25 = sshll.u32 %s1520_s15, 7  ;;  %v1117_v4 = vld [vmem:[%s1511_s1 + $0x8] sm:$0xff]   ;;  %vm417_vm1 = vcmask 588800   ;;  %v1118_v7 = vld [vmem:[%s1511_s1] sm:$0xff]   ;;  %s1013_s7 = sshll.u32 %s1520_s15, 8 }
   0xe   : > { %1037 = vmatpush3.bf16.msra.mxu0 %v468_v2  ;;  %1083 = vmatpush3.bf16.msra.mxu1 %v468_v2  ;;  %s1284_s30 = scalar_lea.vmem %s1510_s0, %s1012_s25  ;;  %v1325_v22 = vld [vmem:[%s1512_s2] ss:$0 sm:$0xff]  ;;  %s1332_s12 = scalar_lea.vmem %s1513_s3, %s1013_s7  ;;  %vm631_vm2 = vcmask 31744  }
   0xf   : > { %1038 = vmatprep.subr.bf16.mxu0 %v1115_v1  ;;  %1079 = vmatprep.subr.bf16.mxu1 %v1115_v1  ;;  %v1119_v5 = vld [vmem:[%s1284_s30] sm:$0xff]   ;;  %v1121_v8 = vld [vmem:[%s1284_s30 + $0x8] sm:$0xff]   ;;  %v1123_v10 = vld [vmem:[%s1284_s30 + $0x10] sm:$0xff]   ;;  %s1392_s19 = scalar_lea.vmem %s1514_s4, %s1013_s7 }
  0x10   : > { %v1120_v6 = vld [vmem:[%s1284_s30 + $0x40] sm:$0xff]   ;;  %1046 = vmatprep.mubr.msk.bf16.mxu0 %vm417_vm1, %v1119_v5  ;;  %v1122_v9 = vld [vmem:[%s1284_s30 + $0x48] sm:$0xff]   ;;  %v1124_v11 = vld [vmem:[%s1284_s30 + $0x50] sm:$0xff]  }
  0x11   : > { %1062 = vmatprep.mubr.msk.bf16.mxu1 %vm417_vm1, %v1120_v6  ;;  %v1125_v12 = vld [vmem:[%s1284_s30 + $0x18] sm:$0xff]   ;;  %v1127_v14 = vld [vmem:[%s1284_s30 + $0x20] sm:$0xff]   ;;  %v1129_v16 = vld [vmem:[%s1284_s30 + $0x28] sm:$0xff]  }
  0x12   : > { %1039 = vmatpush3.bf16.msra.mxu0 %v1115_v1  ;;  %1084 = vmatpush3.bf16.msra.mxu1 %v1115_v1  ;;  %v1126_v13 = vld [vmem:[%s1284_s30 + $0x58] sm:$0xff]   ;;  %v1128_v15 = vld [vmem:[%s1284_s30 + $0x60] sm:$0xff]   ;;  %v1130_v17 = vld [vmem:[%s1284_s30 + $0x68] sm:$0xff]  }
  0x13   : > { %1040 = vmatprep.subr.bf16.mxu0 %v1116_v3  ;;  %1080 = vmatprep.subr.bf16.mxu1 %v1116_v3  ;;  %v1131_v18 = vld [vmem:[%s1284_s30 + $0x30] sm:$0xff]   ;;  %v1133_v20 = vld [vmem:[%s1284_s30 + $0x38] sm:$0xff]  }
  0x14   : > { %v1132_v19 = vld [vmem:[%s1284_s30 + $0x70] sm:$0xff]   ;;  %v1134_v21 = vld [vmem:[%s1284_s30 + $0x78] sm:$0xff]  }
  0x16   : > { %1041 = vmatpush3.bf16.msra.mxu0 %v1116_v3  ;;  %1085 = vmatpush3.bf16.msra.mxu1 %v1116_v3 }
  0x17   : > { %1042 = vmatprep.subr.bf16.mxu0 %v1117_v4  ;;  %1081 = vmatprep.subr.bf16.mxu1 %v1117_v4 }
  0x1a   : > { %1043 = vmatpush3.bf16.msra.mxu0 %v1117_v4  ;;  %1086 = vmatpush3.bf16.msra.mxu1 %v1117_v4 }
  0x1b   : > { %1044 = vmatprep.subr.bf16.mxu0 %v1118_v7  ;;  %1082 = vmatprep.subr.bf16.mxu1 %v1118_v7 }
  0x1e   : > { %1045 = vmatpush3.bf16.msra.mxu0 %v1118_v7  ;;  %1087 = vmatpush3.bf16.msra.mxu1 %v1118_v7 }
  0x21   : > { %1047 = vmatmul.mubr.msk.bf16.vlgmr.msra.gmra.mxu0 %vm417_vm1, %v1121_v8  ;;  %1063 = vmatmul.mubr.msk.bf16.vlgmr.msra.gmra.mxu1 %vm417_vm1, %v1122_v9 }
  0x22   : > { %1050 = vmatprep.mubr.msk.bf16.mxu0 %vm417_vm1, %v1123_v10  ;;  %1066 = vmatprep.mubr.msk.bf16.mxu1 %vm417_vm1, %v1124_v11 }
  0x29   : > { %1051 = vmatmul.mubr.msk.bf16.gmra.mxu0 %vm417_vm1, %v1125_v12  ;;  %1067 = vmatmul.mubr.msk.bf16.gmra.mxu1 %vm417_vm1, %v1126_v13 }
  0x2a   : > { %1054 = vmatprep.mubr.msk.bf16.mxu0 %vm417_vm1, %v1127_v14  ;;  %1070 = vmatprep.mubr.msk.bf16.mxu1 %vm417_vm1, %v1128_v15 }
  0x31   : > { %1055 = vmatmul.mubr.msk.bf16.gmra.mxu0 %vm417_vm1, %v1129_v16  ;;  %1071 = vmatmul.mubr.msk.bf16.gmra.mxu1 %vm417_vm1, %v1130_v17 }
  0x32   : > { %1058 = vmatprep.mubr.msk.bf16.mxu0 %vm417_vm1, %v1131_v18  ;;  %1074 = vmatprep.mubr.msk.bf16.mxu1 %vm417_vm1, %v1132_v19 }
  0x39   : > { %1059 = vmatmul.mubr.msk.bf16.gmra.mxu0 %vm417_vm1, %v1133_v20  ;;  %1075 = vmatmul.mubr.msk.bf16.gmra.mxu1 %vm417_vm1, %v1134_v21 }
  0xe1   : > { %v1048_v23 = vpop.f32.mrf.mxu0  ;;  %v1064_v24 = vpop.f32.mrf.mxu1 }
  0xe2   : > { %v513_v25 = vadd.f32 %v1048_v23, %v1325_v22  ;;  %v577_v26 = vadd.f32 %v1064_v24, %v1325_v22 }
  0xe3   : > { %v504_v27 = vpop.f32.mrf.mxu0  ;;  %v568_v28 = vpop.f32.mrf.mxu1 }
  0xe4   : > { %634 = vst.msk [vmem:[%s1332_s12 + $0x10] sm:$0xff] %vm631_vm2, %v513_v25  ;;  %v666_v29 = vmul.f32 0.5, %v513_v25  ;;  %650 = vst.msk [vmem:[%s1332_s12 + $0x90] sm:$0xff] %vm631_vm2, %v577_v26  ;;  %v682_v30 = vmul.f32 0.5, %v577_v26  ;;  %v505_v31 = vadd.f32 %v1325_v22, %v504_v27  ;;  %v569_v32 = vadd.f32 %v1325_v22, %v568_v28 }
  0xe5   : > { %v1049_v33 = vpop.f32.mrf.mxu0  ;;  %v1065_v34 = vpop.f32.mrf.mxu1 }
  0xe6   : > { %1135 = vtanh.f32 %v666_v29  ;;  %632 = vst.msk [vmem:[%s1332_s12] sm:$0xff] %vm631_vm2, %v505_v31  ;;  %v664_v35 = vmul.f32 0.5, %v505_v31  ;;  %648 = vst.msk [vmem:[%s1332_s12 + $0x80] sm:$0xff] %vm631_vm2, %v569_v32  ;;  %v680_v36 = vmul.f32 0.5, %v569_v32  ;;  %v516_v37 = vadd.f32 %v1049_v33, %v1325_v22 }
  0xe7   : > { %1137 = vtanh.f32 %v682_v30  ;;  %v580_v38 = vadd.f32 %v1065_v34, %v1325_v22  ;;  %v507_v39 = vpop.f32.mrf.mxu0  ;;  %v571_v40 = vpop.f32.mrf.mxu1 }
  0xe8   : > { %1139 = vtanh.f32 %v664_v35  ;;  %635 = vst.msk [vmem:[%s1332_s12 + $0x18] sm:$0xff] %vm631_vm2, %v516_v37  ;;  %v667_v41 = vmul.f32 0.5, %v516_v37  ;;  %v508_v42 = vadd.f32 %v1325_v22, %v507_v39  ;;  %v572_v43 = vadd.f32 %v1325_v22, %v571_v40 }
  0xe9   : > { %1141 = vtanh.f32 %v680_v36  ;;  %651 = vst.msk [vmem:[%s1332_s12 + $0x98] sm:$0xff] %vm631_vm2, %v580_v38  ;;  %v683_v44 = vmul.f32 0.5, %v580_v38  ;;  %v1052_v45 = vpop.f32.mrf.mxu0  ;;  %v1068_v46 = vpop.f32.mrf.mxu1 }
  0xea   : > { %1143 = vtanh.f32 %v667_v41  ;;  %633 = vst.msk [vmem:[%s1332_s12 + $0x8] sm:$0xff] %vm631_vm2, %v508_v42  ;;  %v665_v47 = vmul.f32 0.5, %v508_v42  ;;  %649 = vst.msk [vmem:[%s1332_s12 + $0x88] sm:$0xff] %vm631_vm2, %v572_v43  ;;  %v681_v48 = vmul.f32 0.5, %v572_v43  ;;  %v529_v49 = vadd.f32 %v1052_v45, %v1325_v22 }
  0xeb   : > { %1145 = vtanh.f32 %v683_v44  ;;  %v593_v50 = vadd.f32 %v1068_v46, %v1325_v22  ;;  %v520_v51 = vpop.f32.mrf.mxu0  ;;  %v584_v52 = vpop.f32.mrf.mxu1 }
  0xec   : > { %1147 = vtanh.f32 %v665_v47  ;;  %638 = vst.msk [vmem:[%s1332_s12 + $0x30] sm:$0xff] %vm631_vm2, %v529_v49  ;;  %v670_v53 = vmul.f32 0.5, %v529_v49  ;;  %v521_v54 = vadd.f32 %v1325_v22, %v520_v51  ;;  %v585_v55 = vadd.f32 %v1325_v22, %v584_v52 }
  0xed   : > { %1149 = vtanh.f32 %v681_v48  ;;  %654 = vst.msk [vmem:[%s1332_s12 + $0xb0] sm:$0xff] %vm631_vm2, %v593_v50  ;;  %v686_v56 = vmul.f32 0.5, %v593_v50  ;;  %v1053_v57 = vpop.f32.mrf.mxu0  ;;  %v1069_v58 = vpop.f32.mrf.mxu1 }
  0xee   : > { %1151 = vtanh.f32 %v670_v53  ;;  %636 = vst.msk [vmem:[%s1332_s12 + $0x20] sm:$0xff] %vm631_vm2, %v521_v54  ;;  %v668_v59 = vmul.f32 0.5, %v521_v54  ;;  %652 = vst.msk [vmem:[%s1332_s12 + $0xa0] sm:$0xff] %vm631_vm2, %v585_v55  ;;  %v684_v60 = vmul.f32 0.5, %v585_v55  ;;  %v532_v61 = vadd.f32 %v1053_v57, %v1325_v22 }
  0xef   : > { %1153 = vtanh.f32 %v686_v56  ;;  %v596_v62 = vadd.f32 %v1069_v58, %v1325_v22  ;;  %v523_v63 = vpop.f32.mrf.mxu0  ;;  %v587_v0 = vpop.f32.mrf.mxu1 }
  0xf0   : > { %1155 = vtanh.f32 %v668_v59  ;;  %639 = vst.msk [vmem:[%s1332_s12 + $0x38] sm:$0xff] %vm631_vm2, %v532_v61  ;;  %v671_v1 = vmul.f32 0.5, %v532_v61  ;;  %v524_v2 = vadd.f32 %v1325_v22, %v523_v63  ;;  %v588_v3 = vadd.f32 %v1325_v22, %v587_v0 }
  0xf1   : > { %1157 = vtanh.f32 %v684_v60  ;;  %655 = vst.msk [vmem:[%s1332_s12 + $0xb8] sm:$0xff] %vm631_vm2, %v596_v62  ;;  %v687_v4 = vmul.f32 0.5, %v596_v62  ;;  %v1056_v5 = vpop.f32.mrf.mxu0  ;;  %v1072_v6 = vpop.f32.mrf.mxu1 }
  0xf2   : > { %1159 = vtanh.f32 %v671_v1  ;;  %637 = vst.msk [vmem:[%s1332_s12 + $0x28] sm:$0xff] %vm631_vm2, %v524_v2  ;;  %v669_v7 = vmul.f32 0.5, %v524_v2  ;;  %653 = vst.msk [vmem:[%s1332_s12 + $0xa8] sm:$0xff] %vm631_vm2, %v588_v3  ;;  %v685_v8 = vmul.f32 0.5, %v588_v3  ;;  %v545_v9 = vadd.f32 %v1056_v5, %v1325_v22 }
  0xf3   : > { %v1136_v10 = vpop.eup %1135  ;;  %1161 = vtanh.f32 %v687_v4  ;;  %v609_v11 = vadd.f32 %v1072_v6, %v1325_v22  ;;  %v536_v12 = vpop.f32.mrf.mxu0 }
  0xf4   : > { %v600_v13 = vpop.f32.mrf.mxu1  ;;  %v1138_v14 = vpop.eup %1137  ;;  %v730_v15 = vadd.f32 1.0, %v1136_v10  ;;  %1163 = vtanh.f32 %v669_v7  ;;  %642 = vst.msk [vmem:[%s1332_s12 + $0x50] sm:$0xff] %vm631_vm2, %v545_v9  ;;  %v674_v16 = vmul.f32 0.5, %v545_v9  ;;  %v537_v17 = vadd.f32 %v1325_v22, %v536_v12 }
  0xf5   : > { %v1140_v18 = vpop.eup %1139  ;;  %v746_v19 = vadd.f32 1.0, %v1138_v14  ;;  %1165 = vtanh.f32 %v685_v8  ;;  %658 = vst.msk [vmem:[%s1332_s12 + $0xd0] sm:$0xff] %vm631_vm2, %v609_v11  ;;  %v690_v20 = vmul.f32 0.5, %v609_v11  ;;  %v601_v21 = vadd.f32 %v1325_v22, %v600_v13  ;;  %v1057_v23 = vpop.f32.mrf.mxu0 }
  0xf6   : > { %v1073_v24 = vpop.f32.mrf.mxu1  ;;  %v1142_v25 = vpop.eup %1141  ;;  %v762_v26 = vmul.f32 0.5, %v730_v15  ;;  %v728_v27 = vadd.f32 1.0, %v1140_v18  ;;  %1167 = vtanh.f32 %v674_v16  ;;  %640 = vst.msk [vmem:[%s1332_s12 + $0x40] sm:$0xff] %vm631_vm2, %v537_v17  ;;  %v672_v28 = vmul.f32 0.5, %v537_v17 }
  0xf7   : > { %v1144_v29 = vpop.eup %1143  ;;  %v778_v30 = vmul.f32 0.5, %v746_v19  ;;  %v744_v31 = vadd.f32 1.0, %v1142_v25  ;;  %1169 = vtanh.f32 %v690_v20  ;;  %656 = vst.msk [vmem:[%s1332_s12 + $0xc0] sm:$0xff] %vm631_vm2, %v601_v21  ;;  %v688_v32 = vmul.f32 0.5, %v601_v21  ;;  %v539_v33 = vpop.f32.mrf.mxu0 }
  0xf8   : > { %v603_v34 = vpop.f32.mrf.mxu1  ;;  %v1146_v35 = vpop.eup %1145  ;;  %794 = vst.msk [vmem:[%s1392_s19 + $0x10] sm:$0xff] %vm631_vm2, %v762_v26  ;;  %v760_v36 = vmul.f32 0.5, %v728_v27  ;;  %v731_v37 = vadd.f32 1.0, %v1144_v29  ;;  %1171 = vtanh.f32 %v672_v28  ;;  %v548_v38 = vadd.f32 %v1057_v23, %v1325_v22 }
  0xf9   : > { %v1148_v39 = vpop.eup %1147  ;;  %810 = vst.msk [vmem:[%s1392_s19 + $0x90] sm:$0xff] %vm631_vm2, %v778_v30  ;;  %v776_v40 = vmul.f32 0.5, %v744_v31  ;;  %v747_v41 = vadd.f32 1.0, %v1146_v35  ;;  %1173 = vtanh.f32 %v688_v32  ;;  %v612_v42 = vadd.f32 %v1073_v24, %v1325_v22  ;;  %v1060_v43 = vpop.f32.mrf.mxu0 }
  0xfa   : > { %v1076_v44 = vpop.f32.mrf.mxu1  ;;  %v1150_v45 = vpop.eup %1149  ;;  %792 = vst.msk [vmem:[%s1392_s19] sm:$0xff] %vm631_vm2, %v760_v36  ;;  %v763_v46 = vmul.f32 0.5, %v731_v37  ;;  %v729_v47 = vadd.f32 1.0, %v1148_v39  ;;  %643 = vst.msk [vmem:[%s1332_s12 + $0x58] sm:$0xff] %vm631_vm2, %v548_v38  ;;  %v675_v48 = vmul.f32 0.5, %v548_v38  ;;  %v540_v49 = vadd.f32 %v1325_v22, %v539_v33 }
  0xfb   : > { %v1152_v50 = vpop.eup %1151  ;;  %808 = vst.msk [vmem:[%s1392_s19 + $0x80] sm:$0xff] %vm631_vm2, %v776_v40  ;;  %v779_v51 = vmul.f32 0.5, %v747_v41  ;;  %v745_v52 = vadd.f32 1.0, %v1150_v45  ;;  %659 = vst.msk [vmem:[%s1332_s12 + $0xd8] sm:$0xff] %vm631_vm2, %v612_v42  ;;  %v691_v53 = vmul.f32 0.5, %v612_v42  ;;  %v604_v54 = vadd.f32 %v1325_v22, %v603_v34  ;;  %v552_v55 = vpop.f32.mrf.mxu0 }
  0xfc   : > { %v1154_v56 = vpop.eup %1153  ;;  %795 = vst.msk [vmem:[%s1392_s19 + $0x18] sm:$0xff] %vm631_vm2, %v763_v46  ;;  %v761_v57 = vmul.f32 0.5, %v729_v47  ;;  %v734_v58 = vadd.f32 1.0, %v1152_v50  ;;  %1175 = vtanh.f32 %v675_v48  ;;  %641 = vst.msk [vmem:[%s1332_s12 + $0x48] sm:$0xff] %vm631_vm2, %v540_v49  ;;  %v673_v59 = vmul.f32 0.5, %v540_v49  ;;  %v616_v60 = vpop.f32.mrf.mxu1 }
  0xfd   : > { %v1156_v61 = vpop.eup %1155  ;;  %811 = vst.msk [vmem:[%s1392_s19 + $0x98] sm:$0xff] %vm631_vm2, %v779_v51  ;;  %v777_v62 = vmul.f32 0.5, %v745_v52  ;;  %v750_v63 = vadd.f32 1.0, %v1154_v56  ;;  %1177 = vtanh.f32 %v691_v53  ;;  %657 = vst.msk [vmem:[%s1332_s12 + $0xc8] sm:$0xff] %vm631_vm2, %v604_v54  ;;  %v689_v0 = vmul.f32 0.5, %v604_v54  ;;  %v1061_v9 = vpop.f32.mrf.mxu0 }
  0xfe   : > { %v1158_v1 = vpop.eup %1157  ;;  %793 = vst.msk [vmem:[%s1392_s19 + $0x8] sm:$0xff] %vm631_vm2, %v761_v57  ;;  %v766_v2 = vmul.f32 0.5, %v734_v58  ;;  %v732_v3 = vadd.f32 1.0, %v1156_v61  ;;  %1179 = vtanh.f32 %v673_v59  ;;  %v561_v4 = vadd.f32 %v1060_v43, %v1325_v22  ;;  %v1077_v15 = vpop.f32.mrf.mxu1 }
  0xff   : > { %v1160_v5 = vpop.eup %1159  ;;  %809 = vst.msk [vmem:[%s1392_s19 + $0x88] sm:$0xff] %vm631_vm2, %v777_v62  ;;  %v782_v6 = vmul.f32 0.5, %v750_v63  ;;  %v748_v7 = vadd.f32 1.0, %v1158_v1  ;;  %1181 = vtanh.f32 %v689_v0  ;;  %v625_v8 = vadd.f32 %v1076_v44, %v1325_v22  ;;  %v555_v30 = vpop.f32.mrf.mxu0 }
 0x100   : > { %v1162_v10 = vpop.eup %1161  ;;  %798 = vst.msk [vmem:[%s1392_s19 + $0x30] sm:$0xff] %vm631_vm2, %v766_v2  ;;  %v764_v11 = vmul.f32 0.5, %v732_v3  ;;  %v735_v12 = vadd.f32 1.0, %v1160_v5  ;;  %646 = vst.msk [vmem:[%s1332_s12 + $0x70] sm:$0xff] %vm631_vm2, %v561_v4  ;;  %v678_v13 = vmul.f32 0.5, %v561_v4  ;;  %v553_v14 = vadd.f32 %v1325_v22, %v552_v55  ;;  %v619_v35 = vpop.f32.mrf.mxu1 }
 0x101   : > { %v1164_v16 = vpop.eup %1163  ;;  %814 = vst.msk [vmem:[%s1392_s19 + $0xb0] sm:$0xff] %vm631_vm2, %v782_v6  ;;  %v780_v17 = vmul.f32 0.5, %v748_v7  ;;  %v751_v18 = vadd.f32 1.0, %v1162_v10  ;;  %662 = vst.msk [vmem:[%s1332_s12 + $0xf0] sm:$0xff] %vm631_vm2, %v625_v8  ;;  %v694_v19 = vmul.f32 0.5, %v625_v8  ;;  %v617_v20 = vadd.f32 %v1325_v22, %v616_v60 }
 0x102   : > { %v1166_v21 = vpop.eup %1165  ;;  %796 = vst.msk [vmem:[%s1392_s19 + $0x20] sm:$0xff] %vm631_vm2, %v764_v11  ;;  %v767_v23 = vmul.f32 0.5, %v735_v12  ;;  %v733_v24 = vadd.f32 1.0, %v1164_v16  ;;  %1183 = vtanh.f32 %v678_v13  ;;  %644 = vst.msk [vmem:[%s1332_s12 + $0x60] sm:$0xff] %vm631_vm2, %v553_v14  ;;  %v676_v25 = vmul.f32 0.5, %v553_v14 }
 0x103   : > { %v1168_v26 = vpop.eup %1167  ;;  %812 = vst.msk [vmem:[%s1392_s19 + $0xa0] sm:$0xff] %vm631_vm2, %v780_v17  ;;  %v783_v27 = vmul.f32 0.5, %v751_v18  ;;  %v749_v28 = vadd.f32 1.0, %v1166_v21  ;;  %1185 = vtanh.f32 %v694_v19  ;;  %660 = vst.msk [vmem:[%s1332_s12 + $0xe0] sm:$0xff] %vm631_vm2, %v617_v20  ;;  %v692_v29 = vmul.f32 0.5, %v617_v20 }
 0x104   : > { %v1170_v31 = vpop.eup %1169  ;;  %799 = vst.msk [vmem:[%s1392_s19 + $0x38] sm:$0xff] %vm631_vm2, %v767_v23  ;;  %v765_v32 = vmul.f32 0.5, %v733_v24  ;;  %v738_v33 = vadd.f32 1.0, %v1168_v26  ;;  %1187 = vtanh.f32 %v676_v25  ;;  %v564_v34 = vadd.f32 %v1061_v9, %v1325_v22 }
 0x105   : > { %v1172_v36 = vpop.eup %1171  ;;  %815 = vst.msk [vmem:[%s1392_s19 + $0xb8] sm:$0xff] %vm631_vm2, %v783_v27  ;;  %v781_v37 = vmul.f32 0.5, %v749_v28  ;;  %v754_v38 = vadd.f32 1.0, %v1170_v31  ;;  %1189 = vtanh.f32 %v692_v29  ;;  %v628_v39 = vadd.f32 %v1077_v15, %v1325_v22 }
 0x106   : > { %v1174_v40 = vpop.eup %1173  ;;  %797 = vst.msk [vmem:[%s1392_s19 + $0x28] sm:$0xff] %vm631_vm2, %v765_v32  ;;  %v770_v41 = vmul.f32 0.5, %v738_v33  ;;  %v736_v42 = vadd.f32 1.0, %v1172_v36  ;;  %647 = vst.msk [vmem:[%s1332_s12 + $0x78] sm:$0xff] %vm631_vm2, %v564_v34  ;;  %v679_v43 = vmul.f32 0.5, %v564_v34  ;;  %v556_v44 = vadd.f32 %v1325_v22, %v555_v30 }
 0x107   : > { %813 = vst.msk [vmem:[%s1392_s19 + $0xa8] sm:$0xff] %vm631_vm2, %v781_v37  ;;  %v786_v45 = vmul.f32 0.5, %v754_v38  ;;  %v752_v46 = vadd.f32 1.0, %v1174_v40  ;;  %663 = vst.msk [vmem:[%s1332_s12 + $0xf8] sm:$0xff] %vm631_vm2, %v628_v39  ;;  %v695_v47 = vmul.f32 0.5, %v628_v39  ;;  %v620_v48 = vadd.f32 %v1325_v22, %v619_v35 }
 0x108   : > { %802 = vst.msk [vmem:[%s1392_s19 + $0x50] sm:$0xff] %vm631_vm2, %v770_v41  ;;  %v768_v49 = vmul.f32 0.5, %v736_v42  ;;  %1191 = vtanh.f32 %v679_v43  ;;  %645 = vst.msk [vmem:[%s1332_s12 + $0x68] sm:$0xff] %vm631_vm2, %v556_v44  ;;  %v677_v50 = vmul.f32 0.5, %v556_v44 }
 0x109   : > { %v1176_v51 = vpop.eup %1175  ;;  %818 = vst.msk [vmem:[%s1392_s19 + $0xd0] sm:$0xff] %vm631_vm2, %v786_v45  ;;  %v784_v52 = vmul.f32 0.5, %v752_v46  ;;  %1193 = vtanh.f32 %v695_v47  ;;  %661 = vst.msk [vmem:[%s1332_s12 + $0xe8] sm:$0xff] %vm631_vm2, %v620_v48  ;;  %v693_v53 = vmul.f32 0.5, %v620_v48 }
 0x10a   : > { %v1178_v54 = vpop.eup %1177  ;;  %800 = vst.msk [vmem:[%s1392_s19 + $0x40] sm:$0xff] %vm631_vm2, %v768_v49  ;;  %v739_v22 = vadd.f32 1.0, %v1176_v51  ;;  %1195 = vtanh.f32 %v677_v50 }
 0x10b   : > { %v1180_v55 = vpop.eup %1179  ;;  %816 = vst.msk [vmem:[%s1392_s19 + $0xc0] sm:$0xff] %vm631_vm2, %v784_v52  ;;  %v755_v56 = vadd.f32 1.0, %v1178_v54  ;;  %1197 = vtanh.f32 %v693_v53 }
 0x10c   : > { %v1182_v57 = vpop.eup %1181  ;;  %v771_v58 = vmul.f32 0.5, %v739_v22  ;;  %v737_v59 = vadd.f32 1.0, %v1180_v55 }
 0x10d   : > { %v787_v60 = vmul.f32 0.5, %v755_v56  ;;  %v753_v61 = vadd.f32 1.0, %v1182_v57 }
 0x10e   : > { %803 = vst.msk [vmem:[%s1392_s19 + $0x58] sm:$0xff] %vm631_vm2, %v771_v58  ;;  %v769_v62 = vmul.f32 0.5, %v737_v59 }
 0x10f   : > { %v1184_v63 = vpop.eup %1183  ;;  %819 = vst.msk [vmem:[%s1392_s19 + $0xd8] sm:$0xff] %vm631_vm2, %v787_v60  ;;  %v785_v0 = vmul.f32 0.5, %v753_v61 }
 0x110   : > { %v1186_v1 = vpop.eup %1185  ;;  %801 = vst.msk [vmem:[%s1392_s19 + $0x48] sm:$0xff] %vm631_vm2, %v769_v62  ;;  %v742_v2 = vadd.f32 1.0, %v1184_v63 }
 0x111   : > { %v1188_v3 = vpop.eup %1187  ;;  %817 = vst.msk [vmem:[%s1392_s19 + $0xc8] sm:$0xff] %vm631_vm2, %v785_v0  ;;  %v758_v4 = vadd.f32 1.0, %v1186_v1 }
 0x112   : > { %v1190_v5 = vpop.eup %1189  ;;  %v774_v6 = vmul.f32 0.5, %v742_v2  ;;  %v740_v7 = vadd.f32 1.0, %v1188_v3 }
 0x113   : > { %v790_v8 = vmul.f32 0.5, %v758_v4  ;;  %v756_v9 = vadd.f32 1.0, %v1190_v5 }
 0x114   : > { %806 = vst.msk [vmem:[%s1392_s19 + $0x70] sm:$0xff] %vm631_vm2, %v774_v6  ;;  %v772_v10 = vmul.f32 0.5, %v740_v7 }
 0x115   : > { %v1192_v11 = vpop.eup %1191  ;;  %822 = vst.msk [vmem:[%s1392_s19 + $0xf0] sm:$0xff] %vm631_vm2, %v790_v8  ;;  %v788_v12 = vmul.f32 0.5, %v756_v9 }
 0x116   : > { %v1194_v13 = vpop.eup %1193  ;;  %804 = vst.msk [vmem:[%s1392_s19 + $0x60] sm:$0xff] %vm631_vm2, %v772_v10  ;;  %v743_v14 = vadd.f32 1.0, %v1192_v11 }
 0x117   : > { %v1196_v15 = vpop.eup %1195  ;;  %820 = vst.msk [vmem:[%s1392_s19 + $0xe0] sm:$0xff] %vm631_vm2, %v788_v12  ;;  %v759_v16 = vadd.f32 1.0, %v1194_v13 }
 0x118   : > { %v1198_v17 = vpop.eup %1197  ;;  %v775_v18 = vmul.f32 0.5, %v743_v14  ;;  %v741_v19 = vadd.f32 1.0, %v1196_v15 }
 0x119   : > { %v791_v20 = vmul.f32 0.5, %v759_v16  ;;  %v757_v21 = vadd.f32 1.0, %v1198_v17 }
 0x11a   : > { %807 = vst.msk [vmem:[%s1392_s19 + $0x78] sm:$0xff] %vm631_vm2, %v775_v18  ;;  %v773_v23 = vmul.f32 0.5, %v741_v19 }
 0x11b   : > { %823 = vst.msk [vmem:[%s1392_s19 + $0xf8] sm:$0xff] %vm631_vm2, %v791_v20  ;;  %v789_v24 = vmul.f32 0.5, %v757_v21 }
 0x11c   : > { %805 = vst.msk [vmem:[%s1392_s19 + $0x68] sm:$0xff] %vm631_vm2, %v773_v23 }
 0x11d   : > { %821 = vst.msk [vmem:[%s1392_s19 + $0xe8] sm:$0xff] %vm631_vm2, %v789_v24 }
 0x11e PF: > { %s15_s17 = sadd.s32 1, %s1221_s17   ;;  %s1515_s15 = smov %s1217_s16 }
 0x11f   : > { %p12_p5 = scmp.ge.s32.totalorder %s15_s17, 4   ;;  %s1516_s16 = smov %s1518_s18 }
 0x121   :  { %14 = sbr.rel (!%p12_p5) target bundleno = 2 (0x2), region = 74 }

</bundles_post_ra>
